<compile_context>
chip_gen: v6e
topology: v6e:2x2x1
jax: 0.10.0
libtpu: 0.0.40
codegen_flags: <defaults>
</compile_context>

<pallas_src>
import functools

import jax
import jax.numpy as jnp
from jax import lax
from jax.experimental import pallas as pl
from jax.experimental.pallas import tpu as pltpu


# -----------------------------------------------------------------------------
# Shared coordinate / bilinear-weight math (exactly the PyTorch module's math).
# -----------------------------------------------------------------------------
def _sample_coords(coords_ref, flow_ref, H, W):
    """Returns (x0, x1, y0, y1, w00, w01, w10, w11), each of shape (1, TILE_P)."""
    h = coords_ref[0:1, :]                 # output row index (float)
    w = coords_ref[1:2, :]                 # output col index (float)
    fl = flow_ref[0]                       # (2, TILE_P)
    # voxelmorph 2-D quirk: channel 0 -> grid x (column), channel 1 -> grid y (row)
    x = (h + fl[0:1, :]) / (H - 1) * (W - 1)
    y = (w + fl[1:2, :]) / (W - 1) * (H - 1)
    # padding_mode='border': clamp coordinates
    x = jnp.clip(x, 0.0, W - 1.0)
    y = jnp.clip(y, 0.0, H - 1.0)
    x0f = jnp.floor(x)
    y0f = jnp.floor(y)
    wx = x - x0f
    wy = y - y0f
    x0 = x0f.astype(jnp.int32)
    y0 = y0f.astype(jnp.int32)
    x1 = jnp.minimum(x0 + 1, W - 1)
    y1 = jnp.minimum(y0 + 1, H - 1)
    w00 = (1.0 - wy) * (1.0 - wx)
    w01 = (1.0 - wy) * wx
    w10 = wy * (1.0 - wx)
    w11 = wy * wx
    return x0, x1, y0, y1, w00, w01, w10, w11


# -----------------------------------------------------------------------------
# Primary kernel: 4-corner dynamic gather + VPU bilinear blend.
# -----------------------------------------------------------------------------
def _st_gather_kernel(coords_ref, src_ref, flow_ref, out_ref, *, H, W):
    # coords_ref : (2, TILE_P) f32 ; src_ref : (1, C, P) f32
    # flow_ref   : (1, 2, TILE_P)  ; out_ref : (1, C, TILE_P)
    src = src_ref[0]                                   # (C, P) resident in VMEM
    C = src.shape[0]
    x0, x1, y0, y1, w00, w01, w10, w11 = _sample_coords(coords_ref, flow_ref, H, W)

    def gather(yi, xi):
        flat = yi * W + xi                                          # (1, TILE_P) int32
        idx = jnp.broadcast_to(flat, (C, flat.shape[-1]))           # (C, TILE_P)
        return jnp.take_along_axis(src, idx, axis=1, mode="promise_in_bounds")

    g00 = gather(y0, x0)
    g01 = gather(y0, x1)
    g10 = gather(y1, x0)
    g11 = gather(y1, x1)
    out = w00 * g00 + w01 * g01 + w10 * g10 + w11 * g11             # (C, TILE_P) f32
    out_ref[0] = out.astype(out_ref.dtype)


# -----------------------------------------------------------------------------
# Fallback kernel: one-hot matmul, delta-index nested-select construction.
# Only used if the dynamic-gather lowering is unavailable on this build.
# -----------------------------------------------------------------------------
def _st_onehot_kernel(coords_ref, src_ref, flow_ref, out_ref, *, H, W):
    src = src_ref[0]                                   # (C, P)
    P = src.shape[1]
    x0, x1, y0, y1, w00, w01, w10, w11 = _sample_coords(coords_ref, flow_ref, H, W)
    del x1, y1  # static offsets replace them; border weights are exactly zero
    tile_p = w00.shape[-1]

    flat00 = y0 * W + x0                                            # (1, TILE_P)
    i_in = lax.broadcasted_iota(jnp.int32, (P, tile_p), 0)          # source flat index
    d = i_in - flat00                                               # (P, TILE_P)
    # At the right / bottom border wx / wy are exactly 0, so the weights attached to the
    # wrapped +1 / +W / +W+1 offsets are exactly 0 -> nested select reproduces the
    # reference bit-exactly while avoiding 4 separate one-hot builds + 3 full-size adds.
    comb = jnp.where(d == 0, w00,
           jnp.where(d == 1, w01,
           jnp.where(d == W, w10,
           jnp.where(d == W + 1, w11, 0.0))))                       # (P, TILE_P) f32
    out = jnp.dot(src, comb, preferred_element_type=jnp.float32)    # (C, TILE_P)
    out_ref[0] = out.astype(out_ref.dtype)


# -----------------------------------------------------------------------------
# Generation-aware VMEM accounting / tile planning.
# -----------------------------------------------------------------------------
def _vmem_info():
    """Returns (vmem_limit_bytes to request, per-kernel tile budget in bytes)."""
    try:
        cap = int(getattr(pltpu.get_tpu_info(), "vmem_capacity_bytes", 0)) or (64 << 20)
    except Exception:
        cap = 64 << 20                      # conservative default (v7x per-core size)
    limit = min(int(cap * 0.80), 100 << 20)
    budget = int(cap * 0.55)                # headroom for Mosaic internal scratch
    return limit, budget


def _plan_tile_p(P, C, *, method, src_bufs, budget_bytes, max_tile=2048):
    """Largest legal pixel tile whose total VMEM footprint fits the budget."""
    def footprint(tile):
        fixed = src_bufs * C * P * 4                        # resident src block(s)
        stream = 2 * (2 + 2 + C) * tile * 4                 # double-buffered coords/flow/out
        if method == "gather":
            temps = 8 * C * tile * 4                        # idx + 4 corners + blend temps
        else:                                               # one-hot matmul fallback
            temps = 2 * P * tile * 4 + 4 * C * tile * 4     # comb(f32) + delta(i32) + dot io
        return fixed + stream + temps

    if P % 128 == 0:
        cands = [t for t in range(128, P + 1, 128) if P % t == 0]
    else:
        cands = [P]                                         # full-extent block is always legal
    fitting = [t for t in cands if footprint(t) <= budget_bytes]
    if not fitting:
        raise ValueError(
            f"SpatialTransformer Pallas kernel ({method}) does not fit VMEM: the smallest "
            f"tile needs {footprint(cands[0])} bytes but the budget is {budget_bytes} bytes "
            f"(P={P}, C={C}). Use the gather path and/or reduce channels/image size.")
    capped = [t for t in fitting if t <= max_tile]
    return max(capped) if capped else min(fitting)


# -----------------------------------------------------------------------------
# Wrapper.
# -----------------------------------------------------------------------------
def spatial_transformer(src, flow, *, method="gather", single_buffer_src=True, tile_p=None):
    """src: (B, C, H, W) f32, flow: (B, 2, H, W) f32 -> (B, C, H, W) f32."""
    B, C, H, W = src.shape
    assert flow.shape == (B, 2, H, W)
    assert H >= 2 and W >= 2, "grid normalization divides by (dim - 1)"
    P = H * W

    vmem_limit, budget = _vmem_info()
    src_bufs = 1 if single_buffer_src else 2
    if tile_p is None:
        tile_p = _plan_tile_p(P, C, method=method, src_bufs=src_bufs, budget_bytes=budget)
    assert P % tile_p == 0
    assert tile_p % 128 == 0 or tile_p == P
    num_tiles = P // tile_p

    src_flat = src.reshape(B, C, P)
    flow_flat = flow.reshape(B, 2, P)

    # Hoisted, batch-invariant output-pixel coordinates (h, w) as f32.
    p_idx = jnp.arange(P, dtype=jnp.int32)
    coords = jnp.stack([(p_idx // W).astype(jnp.float32),
                        (p_idx % W).astype(jnp.float32)], axis=0)       # (2, P)

    src_spec_kwargs = {}
    if single_buffer_src:
        # src's block index is constant along the tile axis: one buffer is enough.
        src_spec_kwargs["pipeline_mode"] = pl.Buffered(1)
    src_spec = pl.BlockSpec((1, C, P), lambda b, t: (b, 0, 0), **src_spec_kwargs)

    kernel_fn = _st_gather_kernel if method == "gather" else _st_onehot_kernel
    kernel = functools.partial(kernel_fn, H=H, W=W)

    # Megacore: shard the batch axis when possible so each core keeps one src image
    # instead of both cores holding/re-fetching the same one.
    dims = ("parallel", "arbitrary") if B > 1 else ("arbitrary", "parallel")

    out_flat = pl.pallas_call(
        kernel,
        out_shape=jax.ShapeDtypeStruct((B, C, P), src.dtype),
        grid=(B, num_tiles),
        in_specs=[
            pl.BlockSpec((2, tile_p), lambda b, t: (0, t)),         # coords (const)
            src_spec,                                               # full src / batch
            pl.BlockSpec((1, 2, tile_p), lambda b, t: (b, 0, t)),   # flow tile
        ],
        out_specs=pl.BlockSpec((1, C, tile_p), lambda b, t: (b, 0, t)),
        compiler_params=pltpu.CompilerParams(
            dimension_semantics=dims,
            vmem_limit_bytes=vmem_limit,
        ),
    )(coords, src_flat, flow_flat)
    return out_flat.reshape(B, C, H, W)


# -----------------------------------------------------------------------------
# Pure-JAX reference replicating the PyTorch module's forward (2-D case).
# -----------------------------------------------------------------------------
def reference_forward(src, flow):
    B, C, H, W = src.shape
    hh = jnp.arange(H, dtype=jnp.float32)[None, :, None]    # (1, H, 1)
    ww = jnp.arange(W, dtype=jnp.float32)[None, None, :]    # (1, 1, W)
    x = (hh + flow[:, 0]) / (H - 1) * (W - 1)                # (B, H, W) col
    y = (ww + flow[:, 1]) / (W - 1) * (H - 1)                # (B, H, W) row
    x = jnp.clip(x, 0.0, W - 1.0)
    y = jnp.clip(y, 0.0, H - 1.0)
    x0f = jnp.floor(x)
    y0f = jnp.floor(y)
    wx = (x - x0f)[:, None]                                  # (B, 1, H, W)
    wy = (y - y0f)[:, None]
    x0 = x0f.astype(jnp.int32)
    y0 = y0f.astype(jnp.int32)
    x1 = jnp.minimum(x0 + 1, W - 1)
    y1 = jnp.minimum(y0 + 1, H - 1)

    def sample(s, yi, xi):        # s: (C, H, W), yi/xi: (H, W)
        return s[:, yi, xi]       # (C, H, W)

    g00 = jax.vmap(sample)(src, y0, x0)
    g01 = jax.vmap(sample)(src, y0, x1)
    g10 = jax.vmap(sample)(src, y1, x0)
    g11 = jax.vmap(sample)(src, y1, x1)
    return ((1.0 - wy) * (1.0 - wx)) * g00 + ((1.0 - wy) * wx) * g01 \
         + (wy * (1.0 - wx)) * g10 + (wy * wx) * g11


if __name__ == "__main__":
    # Module has no learnable parameters; the 'grid' buffer is rebuilt from shape.
    B, C, H, W = 2, 4, 16, 16
    key = jax.random.PRNGKey(0)
    k_src, k_flow = jax.random.split(key)
    src = jax.random.normal(k_src, (B, C, H, W), dtype=jnp.float32)
    flow = 3.0 * jax.random.normal(k_flow, (B, 2, H, W), dtype=jnp.float32)

    ref = reference_forward(src, flow)

    # Preference ladder: gather kernel with single-buffered src -> gather with default
    # buffering -> one-hot-matmul fallback (exercised only if this build rejects the
    # dynamic-gather / Buffered(1) lowering).  First config that runs and matches wins.
    attempts = [
        dict(method="gather", single_buffer_src=True),
        dict(method="gather", single_buffer_src=False),
        dict(method="onehot", single_buffer_src=False),
    ]
    out, last_err = None, None
    for cfg in attempts:
        try:
            cand = jax.block_until_ready(spatial_transformer(src, flow, **cfg))
        except Exception as e:           # lowering/compile unsupported for this config
            last_err = e
            continue
        if cand.shape == (B, C, H, W) and bool(
                jnp.allclose(cand, ref, atol=1e-5, rtol=1e-5)):
            out = cand
            break
        last_err = AssertionError(
            f"{cfg} mismatch: max abs err {float(jnp.max(jnp.abs(cand - ref)))}")
    if out is None:
        raise last_err

    print("KERNEL_OK")
</pallas_src>

<mosaic_0001>
module attributes {stable_mosaic.version = 11 : i64} {
  func.func @_st_gather_kernel(%arg0: i32, %arg1: i32, %arg2: memref<2x256xf32, #tpu.memory_space<vmem>>, %arg3: memref<1x4x256xf32, #tpu.memory_space<vmem>>, %arg4: memref<1x2x256xf32, #tpu.memory_space<vmem>>, %arg5: memref<1x4x256xf32, #tpu.memory_space<vmem>>) attributes {dimension_semantics = [#tpu.dimension_semantics<parallel>, #tpu.dimension_semantics<arbitrary>], iteration_bounds = array<i64: 2, 1>, scalar_prefetch = 0 : i64, scratch_operands = 0 : i64, tpu.core_type = #tpu.core_type<tc>, window_params = [{transform_indices = @transform_0, window_bounds = array<i64: 2, 256>}, {pipeline_mode = #tpu.pipeline_mode<synchronous>, transform_indices = @transform_1, window_bounds = array<i64: 1, 4, 256>}, {transform_indices = @transform_2, window_bounds = array<i64: 1, 2, 256>}, {transform_indices = @transform_3, window_bounds = array<i64: 1, 4, 256>}]} {
    %c0 = arith.constant 0 : index
    %c0_0 = arith.constant 0 : index
    %c0_1 = arith.constant 0 : index
    %0 = vector.load %arg3[%c0, %c0_0, %c0_1] : memref<1x4x256xf32, #tpu.memory_space<vmem>>, vector<1x4x256xf32>
    %1 = vector.shape_cast %0 : vector<1x4x256xf32> to vector<4x256xf32>
    %c0_2 = arith.constant 0 : index
    %c0_3 = arith.constant 0 : index
    %2 = vector.load %arg2[%c0_2, %c0_3] : memref<2x256xf32, #tpu.memory_space<vmem>>, vector<1x256xf32>
    %c1 = arith.constant 1 : index
    %c0_4 = arith.constant 0 : index
    %3 = vector.load %arg2[%c1, %c0_4] : memref<2x256xf32, #tpu.memory_space<vmem>>, vector<1x256xf32>
    %c0_5 = arith.constant 0 : index
    %c0_6 = arith.constant 0 : index
    %c0_7 = arith.constant 0 : index
    %4 = vector.load %arg4[%c0_5, %c0_6, %c0_7] : memref<1x2x256xf32, #tpu.memory_space<vmem>>, vector<1x2x256xf32>
    %5 = vector.shape_cast %4 : vector<1x2x256xf32> to vector<2x256xf32>
    %6 = vector.extract_strided_slice %5 {offsets = [0, 0], sizes = [1, 256], strides = [1, 1]} : vector<2x256xf32> to vector<1x256xf32>
    %7 = arith.addf %2, %6 : vector<1x256xf32>
    %cst = arith.constant 1.500000e+01 : f32
    %8 = vector.broadcast %cst : f32 to vector<1x256xf32>
    %9 = arith.divf %7, %8 : vector<1x256xf32>
    %cst_8 = arith.constant 1.500000e+01 : f32
    %10 = vector.broadcast %cst_8 : f32 to vector<1x256xf32>
    %11 = arith.mulf %9, %10 : vector<1x256xf32>
    %12 = vector.extract_strided_slice %5 {offsets = [1, 0], sizes = [1, 256], strides = [1, 1]} : vector<2x256xf32> to vector<1x256xf32>
    %13 = arith.addf %3, %12 : vector<1x256xf32>
    %cst_9 = arith.constant 1.500000e+01 : f32
    %14 = vector.broadcast %cst_9 : f32 to vector<1x256xf32>
    %15 = arith.divf %13, %14 : vector<1x256xf32>
    %cst_10 = arith.constant 1.500000e+01 : f32
    %16 = vector.broadcast %cst_10 : f32 to vector<1x256xf32>
    %17 = arith.mulf %15, %16 : vector<1x256xf32>
    %cst_11 = arith.constant 0.000000e+00 : f32
    %cst_12 = arith.constant 1.500000e+01 : f32
    %18 = vector.broadcast %cst_11 : f32 to vector<1x256xf32>
    %19 = arith.maximumf %18, %11 : vector<1x256xf32>
    %20 = vector.broadcast %cst_12 : f32 to vector<1x256xf32>
    %21 = arith.minimumf %20, %19 : vector<1x256xf32>
    %cst_13 = arith.constant 0.000000e+00 : f32
    %cst_14 = arith.constant 1.500000e+01 : f32
    %22 = vector.broadcast %cst_13 : f32 to vector<1x256xf32>
    %23 = arith.maximumf %22, %17 : vector<1x256xf32>
    %24 = vector.broadcast %cst_14 : f32 to vector<1x256xf32>
    %25 = arith.minimumf %24, %23 : vector<1x256xf32>
    %26 = math.floor %21 : vector<1x256xf32>
    %27 = math.floor %25 : vector<1x256xf32>
    %28 = arith.subf %21, %26 : vector<1x256xf32>
    %29 = arith.subf %25, %27 : vector<1x256xf32>
    %30 = arith.fptosi %26 : vector<1x256xf32> to vector<1x256xi32>
    %31 = arith.fptosi %27 : vector<1x256xf32> to vector<1x256xi32>
    %c1_i32 = arith.constant 1 : i32
    %32 = vector.broadcast %c1_i32 : i32 to vector<1x256xi32>
    %33 = arith.addi %30, %32 : vector<1x256xi32>
    %c15_i32 = arith.constant 15 : i32
    %34 = vector.broadcast %c15_i32 : i32 to vector<1x256xi32>
    %35 = arith.minsi %33, %34 : vector<1x256xi32>
    %c1_i32_15 = arith.constant 1 : i32
    %36 = vector.broadcast %c1_i32_15 : i32 to vector<1x256xi32>
    %37 = arith.addi %31, %36 : vector<1x256xi32>
    %c15_i32_16 = arith.constant 15 : i32
    %38 = vector.broadcast %c15_i32_16 : i32 to vector<1x256xi32>
    %39 = arith.minsi %37, %38 : vector<1x256xi32>
    %cst_17 = arith.constant 1.000000e+00 : f32
    %40 = vector.broadcast %cst_17 : f32 to vector<1x256xf32>
    %41 = arith.subf %40, %29 : vector<1x256xf32>
    %cst_18 = arith.constant 1.000000e+00 : f32
    %42 = vector.broadcast %cst_18 : f32 to vector<1x256xf32>
    %43 = arith.subf %42, %28 : vector<1x256xf32>
    %44 = arith.mulf %41, %43 : vector<1x256xf32>
    %cst_19 = arith.constant 1.000000e+00 : f32
    %45 = vector.broadcast %cst_19 : f32 to vector<1x256xf32>
    %46 = arith.subf %45, %29 : vector<1x256xf32>
    %47 = arith.mulf %46, %28 : vector<1x256xf32>
    %cst_20 = arith.constant 1.000000e+00 : f32
    %48 = vector.broadcast %cst_20 : f32 to vector<1x256xf32>
    %49 = arith.subf %48, %28 : vector<1x256xf32>
    %50 = arith.mulf %29, %49 : vector<1x256xf32>
    %51 = arith.mulf %29, %28 : vector<1x256xf32>
    %c16_i32 = arith.constant 16 : i32
    %52 = vector.broadcast %c16_i32 : i32 to vector<1x256xi32>
    %53 = arith.muli %31, %52 : vector<1x256xi32>
    %54 = arith.addi %53, %30 : vector<1x256xi32>
    %55 = vector.shape_cast %54 : vector<1x256xi32> to vector<1x256xi32>
    %56 = vector.broadcast %55 : vector<1x256xi32> to vector<4x256xi32>
    %57 = vector.shape_cast %56 : vector<4x256xi32> to vector<4x256x1xi32>
    %58 = vector.shape_cast %57 : vector<4x256x1xi32> to vector<4x256xi32>
    %59 = tpu.dynamic_gather %1[%58] in [1] : vector<4x256xf32>, vector<4x256xi32> -> vector<4x256xf32>
    %c16_i32_21 = arith.constant 16 : i32
    %60 = vector.broadcast %c16_i32_21 : i32 to vector<1x256xi32>
    %61 = arith.muli %31, %60 : vector<1x256xi32>
    %62 = arith.addi %61, %35 : vector<1x256xi32>
    %63 = vector.shape_cast %62 : vector<1x256xi32> to vector<1x256xi32>
    %64 = vector.broadcast %63 : vector<1x256xi32> to vector<4x256xi32>
    %65 = vector.shape_cast %64 : vector<4x256xi32> to vector<4x256x1xi32>
    %66 = vector.shape_cast %65 : vector<4x256x1xi32> to vector<4x256xi32>
    %67 = tpu.dynamic_gather %1[%66] in [1] : vector<4x256xf32>, vector<4x256xi32> -> vector<4x256xf32>
    %c16_i32_22 = arith.constant 16 : i32
    %68 = vector.broadcast %c16_i32_22 : i32 to vector<1x256xi32>
    %69 = arith.muli %39, %68 : vector<1x256xi32>
    %70 = arith.addi %69, %30 : vector<1x256xi32>
    %71 = vector.shape_cast %70 : vector<1x256xi32> to vector<1x256xi32>
    %72 = vector.broadcast %71 : vector<1x256xi32> to vector<4x256xi32>
    %73 = vector.shape_cast %72 : vector<4x256xi32> to vector<4x256x1xi32>
    %74 = vector.shape_cast %73 : vector<4x256x1xi32> to vector<4x256xi32>
    %75 = tpu.dynamic_gather %1[%74] in [1] : vector<4x256xf32>, vector<4x256xi32> -> vector<4x256xf32>
    %c16_i32_23 = arith.constant 16 : i32
    %76 = vector.broadcast %c16_i32_23 : i32 to vector<1x256xi32>
    %77 = arith.muli %39, %76 : vector<1x256xi32>
    %78 = arith.addi %77, %35 : vector<1x256xi32>
    %79 = vector.shape_cast %78 : vector<1x256xi32> to vector<1x256xi32>
    %80 = vector.broadcast %79 : vector<1x256xi32> to vector<4x256xi32>
    %81 = vector.shape_cast %80 : vector<4x256xi32> to vector<4x256x1xi32>
    %82 = vector.shape_cast %81 : vector<4x256x1xi32> to vector<4x256xi32>
    %83 = tpu.dynamic_gather %1[%82] in [1] : vector<4x256xf32>, vector<4x256xi32> -> vector<4x256xf32>
    %84 = vector.broadcast %44 : vector<1x256xf32> to vector<4x256xf32>
    %85 = arith.mulf %84, %59 : vector<4x256xf32>
    %86 = vector.broadcast %47 : vector<1x256xf32> to vector<4x256xf32>
    %87 = arith.mulf %86, %67 : vector<4x256xf32>
    %88 = arith.addf %85, %87 : vector<4x256xf32>
    %89 = vector.broadcast %50 : vector<1x256xf32> to vector<4x256xf32>
    %90 = arith.mulf %89, %75 : vector<4x256xf32>
    %91 = arith.addf %88, %90 : vector<4x256xf32>
    %92 = vector.broadcast %51 : vector<1x256xf32> to vector<4x256xf32>
    %93 = arith.mulf %92, %83 : vector<4x256xf32>
    %94 = arith.addf %91, %93 : vector<4x256xf32>
    %c0_24 = arith.constant 0 : index
    %c0_25 = arith.constant 0 : index
    %c0_26 = arith.constant 0 : index
    %95 = vector.load %arg5[%c0_24, %c0_25, %c0_26] : memref<1x4x256xf32, #tpu.memory_space<vmem>>, vector<1x4x256xf32>
    %96 = vector.shape_cast %95 : vector<1x4x256xf32> to vector<4x256xf32>
    %97 = vector.shape_cast %94 : vector<4x256xf32> to vector<1x4x256xf32>
    tpu.vector_store %arg5[%c0_24, %c0_25, %c0_26], %97 {strides = array<i32>} : memref<1x4x256xf32, #tpu.memory_space<vmem>>, vector<1x4x256xf32>,
    return
  }
  func.func @transform_0(%arg0: i32, %arg1: i32) -> (i32, i32) {
    %c0_i32 = arith.constant 0 : i32
    %c0_i32_0 = arith.constant 0 : i32
    return %c0_i32, %arg1 : i32, i32
  }
  func.func @transform_1(%arg0: i32, %arg1: i32) -> (i32, i32, i32) {
    %c0_i32 = arith.constant 0 : i32
    %c0_i32_0 = arith.constant 0 : i32
    %c0_i32_1 = arith.constant 0 : i32
    return %arg0, %c0_i32, %c0_i32_0 : i32, i32, i32
  }
  func.func @transform_2(%arg0: i32, %arg1: i32) -> (i32, i32, i32) {
    %c0_i32 = arith.constant 0 : i32
    %c0_i32_0 = arith.constant 0 : i32
    return %arg0, %c0_i32, %arg1 : i32, i32, i32
  }
  func.func @transform_3(%arg0: i32, %arg1: i32) -> (i32, i32, i32) {
    %c0_i32 = arith.constant 0 : i32
    %c0_i32_0 = arith.constant 0 : i32
    return %arg0, %c0_i32, %arg1 : i32, i32, i32
  }
}

module attributes {stable_mosaic.version = 11 : i64} {
  func.func @_st_gather_kernel(%arg0: i32, %arg1: i32, %arg2: memref<2x256xf32, #tpu.memory_space<vmem>>, %arg3: memref<1x4x256xf32, #tpu.memory_space<vmem>>, %arg4: memref<1x2x256xf32, #tpu.memory_space<vmem>>, %arg5: memref<1x4x256xf32, #tpu.memory_space<vmem>>) attributes {dimension_semantics = [#tpu.dimension_semantics<parallel>, #tpu.dimension_semantics<arbitrary>], iteration_bounds = array<i64: 2, 1>, scalar_prefetch = 0 : i64, scratch_operands = 0 : i64, tpu.core_type = #tpu.core_type<tc>, window_params = [{transform_indices = @transform_0, window_bounds = array<i64: 2, 256>}, {transform_indices = @transform_1, window_bounds = array<i64: 1, 4, 256>}, {transform_indices = @transform_2, window_bounds = array<i64: 1, 2, 256>}, {transform_indices = @transform_3, window_bounds = array<i64: 1, 4, 256>}]} {
    %c0 = arith.constant 0 : index
    %c0_0 = arith.constant 0 : index
    %c0_1 = arith.constant 0 : index
    %0 = vector.load %arg3[%c0, %c0_0, %c0_1] : memref<1x4x256xf32, #tpu.memory_space<vmem>>, vector<1x4x256xf32>
    %1 = vector.shape_cast %0 : vector<1x4x256xf32> to vector<4x256xf32>
    %c0_2 = arith.constant 0 : index
    %c0_3 = arith.constant 0 : index
    %2 = vector.load %arg2[%c0_2, %c0_3] : memref<2x256xf32, #tpu.memory_space<vmem>>, vector<1x256xf32>
    %c1 = arith.constant 1 : index
    %c0_4 = arith.constant 0 : index
    %3 = vector.load %arg2[%c1, %c0_4] : memref<2x256xf32, #tpu.memory_space<vmem>>, vector<1x256xf32>
    %c0_5 = arith.constant 0 : index
    %c0_6 = arith.constant 0 : index
    %c0_7 = arith.constant 0 : index
    %4 = vector.load %arg4[%c0_5, %c0_6, %c0_7] : memref<1x2x256xf32, #tpu.memory_space<vmem>>, vector<1x2x256xf32>
    %5 = vector.shape_cast %4 : vector<1x2x256xf32> to vector<2x256xf32>
    %6 = vector.extract_strided_slice %5 {offsets = [0, 0], sizes = [1, 256], strides = [1, 1]} : vector<2x256xf32> to vector<1x256xf32>
    %7 = arith.addf %2, %6 : vector<1x256xf32>
    %cst = arith.constant 1.500000e+01 : f32
    %8 = vector.broadcast %cst : f32 to vector<1x256xf32>
    %9 = arith.divf %7, %8 : vector<1x256xf32>
    %cst_8 = arith.constant 1.500000e+01 : f32
    %10 = vector.broadcast %cst_8 : f32 to vector<1x256xf32>
    %11 = arith.mulf %9, %10 : vector<1x256xf32>
    %12 = vector.extract_strided_slice %5 {offsets = [1, 0], sizes = [1, 256], strides = [1, 1]} : vector<2x256xf32> to vector<1x256xf32>
    %13 = arith.addf %3, %12 : vector<1x256xf32>
    %cst_9 = arith.constant 1.500000e+01 : f32
    %14 = vector.broadcast %cst_9 : f32 to vector<1x256xf32>
    %15 = arith.divf %13, %14 : vector<1x256xf32>
    %cst_10 = arith.constant 1.500000e+01 : f32
    %16 = vector.broadcast %cst_10 : f32 to vector<1x256xf32>
    %17 = arith.mulf %15, %16 : vector<1x256xf32>
    %cst_11 = arith.constant 0.000000e+00 : f32
    %cst_12 = arith.constant 1.500000e+01 : f32
    %18 = vector.broadcast %cst_11 : f32 to vector<1x256xf32>
    %19 = arith.maximumf %18, %11 : vector<1x256xf32>
    %20 = vector.broadcast %cst_12 : f32 to vector<1x256xf32>
    %21 = arith.minimumf %20, %19 : vector<1x256xf32>
    %cst_13 = arith.constant 0.000000e+00 : f32
    %cst_14 = arith.constant 1.500000e+01 : f32
    %22 = vector.broadcast %cst_13 : f32 to vector<1x256xf32>
    %23 = arith.maximumf %22, %17 : vector<1x256xf32>
    %24 = vector.broadcast %cst_14 : f32 to vector<1x256xf32>
    %25 = arith.minimumf %24, %23 : vector<1x256xf32>
    %26 = math.floor %21 : vector<1x256xf32>
    %27 = math.floor %25 : vector<1x256xf32>
    %28 = arith.subf %21, %26 : vector<1x256xf32>
    %29 = arith.subf %25, %27 : vector<1x256xf32>
    %30 = arith.fptosi %26 : vector<1x256xf32> to vector<1x256xi32>
    %31 = arith.fptosi %27 : vector<1x256xf32> to vector<1x256xi32>
    %c1_i32 = arith.constant 1 : i32
    %32 = vector.broadcast %c1_i32 : i32 to vector<1x256xi32>
    %33 = arith.addi %30, %32 : vector<1x256xi32>
    %c15_i32 = arith.constant 15 : i32
    %34 = vector.broadcast %c15_i32 : i32 to vector<1x256xi32>
    %35 = arith.minsi %33, %34 : vector<1x256xi32>
    %c1_i32_15 = arith.constant 1 : i32
    %36 = vector.broadcast %c1_i32_15 : i32 to vector<1x256xi32>
    %37 = arith.addi %31, %36 : vector<1x256xi32>
    %c15_i32_16 = arith.constant 15 : i32
    %38 = vector.broadcast %c15_i32_16 : i32 to vector<1x256xi32>
    %39 = arith.minsi %37, %38 : vector<1x256xi32>
    %cst_17 = arith.constant 1.000000e+00 : f32
    %40 = vector.broadcast %cst_17 : f32 to vector<1x256xf32>
    %41 = arith.subf %40, %29 : vector<1x256xf32>
    %cst_18 = arith.constant 1.000000e+00 : f32
    %42 = vector.broadcast %cst_18 : f32 to vector<1x256xf32>
    %43 = arith.subf %42, %28 : vector<1x256xf32>
    %44 = arith.mulf %41, %43 : vector<1x256xf32>
    %cst_19 = arith.constant 1.000000e+00 : f32
    %45 = vector.broadcast %cst_19 : f32 to vector<1x256xf32>
    %46 = arith.subf %45, %29 : vector<1x256xf32>
    %47 = arith.mulf %46, %28 : vector<1x256xf32>
    %cst_20 = arith.constant 1.000000e+00 : f32
    %48 = vector.broadcast %cst_20 : f32 to vector<1x256xf32>
    %49 = arith.subf %48, %28 : vector<1x256xf32>
    %50 = arith.mulf %29, %49 : vector<1x256xf32>
    %51 = arith.mulf %29, %28 : vector<1x256xf32>
    %c16_i32 = arith.constant 16 : i32
    %52 = vector.broadcast %c16_i32 : i32 to vector<1x256xi32>
    %53 = arith.muli %31, %52 : vector<1x256xi32>
    %54 = arith.addi %53, %30 : vector<1x256xi32>
    %55 = vector.shape_cast %54 : vector<1x256xi32> to vector<1x256xi32>
    %56 = vector.broadcast %55 : vector<1x256xi32> to vector<4x256xi32>
    %57 = vector.shape_cast %56 : vector<4x256xi32> to vector<4x256x1xi32>
    %58 = vector.shape_cast %57 : vector<4x256x1xi32> to vector<4x256xi32>
    %59 = tpu.dynamic_gather %1[%58] in [1] : vector<4x256xf32>, vector<4x256xi32> -> vector<4x256xf32>
    %c16_i32_21 = arith.constant 16 : i32
    %60 = vector.broadcast %c16_i32_21 : i32 to vector<1x256xi32>
    %61 = arith.muli %31, %60 : vector<1x256xi32>
    %62 = arith.addi %61, %35 : vector<1x256xi32>
    %63 = vector.shape_cast %62 : vector<1x256xi32> to vector<1x256xi32>
    %64 = vector.broadcast %63 : vector<1x256xi32> to vector<4x256xi32>
    %65 = vector.shape_cast %64 : vector<4x256xi32> to vector<4x256x1xi32>
    %66 = vector.shape_cast %65 : vector<4x256x1xi32> to vector<4x256xi32>
    %67 = tpu.dynamic_gather %1[%66] in [1] : vector<4x256xf32>, vector<4x256xi32> -> vector<4x256xf32>
    %c16_i32_22 = arith.constant 16 : i32
    %68 = vector.broadcast %c16_i32_22 : i32 to vector<1x256xi32>
    %69 = arith.muli %39, %68 : vector<1x256xi32>
    %70 = arith.addi %69, %30 : vector<1x256xi32>
    %71 = vector.shape_cast %70 : vector<1x256xi32> to vector<1x256xi32>
    %72 = vector.broadcast %71 : vector<1x256xi32> to vector<4x256xi32>
    %73 = vector.shape_cast %72 : vector<4x256xi32> to vector<4x256x1xi32>
    %74 = vector.shape_cast %73 : vector<4x256x1xi32> to vector<4x256xi32>
    %75 = tpu.dynamic_gather %1[%74] in [1] : vector<4x256xf32>, vector<4x256xi32> -> vector<4x256xf32>
    %c16_i32_23 = arith.constant 16 : i32
    %76 = vector.broadcast %c16_i32_23 : i32 to vector<1x256xi32>
    %77 = arith.muli %39, %76 : vector<1x256xi32>
    %78 = arith.addi %77, %35 : vector<1x256xi32>
    %79 = vector.shape_cast %78 : vector<1x256xi32> to vector<1x256xi32>
    %80 = vector.broadcast %79 : vector<1x256xi32> to vector<4x256xi32>
    %81 = vector.shape_cast %80 : vector<4x256xi32> to vector<4x256x1xi32>
    %82 = vector.shape_cast %81 : vector<4x256x1xi32> to vector<4x256xi32>
    %83 = tpu.dynamic_gather %1[%82] in [1] : vector<4x256xf32>, vector<4x256xi32> -> vector<4x256xf32>
    %84 = vector.broadcast %44 : vector<1x256xf32> to vector<4x256xf32>
    %85 = arith.mulf %84, %59 : vector<4x256xf32>
    %86 = vector.broadcast %47 : vector<1x256xf32> to vector<4x256xf32>
    %87 = arith.mulf %86, %67 : vector<4x256xf32>
    %88 = arith.addf %85, %87 : vector<4x256xf32>
    %89 = vector.broadcast %50 : vector<1x256xf32> to vector<4x256xf32>
    %90 = arith.mulf %89, %75 : vector<4x256xf32>
    %91 = arith.addf %88, %90 : vector<4x256xf32>
    %92 = vector.broadcast %51 : vector<1x256xf32> to vector<4x256xf32>
    %93 = arith.mulf %92, %83 : vector<4x256xf32>
    %94 = arith.addf %91, %93 : vector<4x256xf32>
    %c0_24 = arith.constant 0 : index
    %c0_25 = arith.constant 0 : index
    %c0_26 = arith.constant 0 : index
    %95 = vector.load %arg5[%c0_24, %c0_25, %c0_26] : memref<1x4x256xf32, #tpu.memory_space<vmem>>, vector<1x4x256xf32>
    %96 = vector.shape_cast %95 : vector<1x4x256xf32> to vector<4x256xf32>
    %97 = vector.shape_cast %94 : vector<4x256xf32> to vector<1x4x256xf32>
    tpu.vector_store %arg5[%c0_24, %c0_25, %c0_26], %97 {strides = array<i32>} : memref<1x4x256xf32, #tpu.memory_space<vmem>>, vector<1x4x256xf32>,
    return
  }
  func.func @transform_0(%arg0: i32, %arg1: i32) -> (i32, i32) {
    %c0_i32 = arith.constant 0 : i32
    %c0_i32_0 = arith.constant 0 : i32
    return %c0_i32, %arg1 : i32, i32
  }
  func.func @transform_1(%arg0: i32, %arg1: i32) -> (i32, i32, i32) {
    %c0_i32 = arith.constant 0 : i32
    %c0_i32_0 = arith.constant 0 : i32
    %c0_i32_1 = arith.constant 0 : i32
    return %arg0, %c0_i32, %c0_i32_0 : i32, i32, i32
  }
  func.func @transform_2(%arg0: i32, %arg1: i32) -> (i32, i32, i32) {
    %c0_i32 = arith.constant 0 : i32
    %c0_i32_0 = arith.constant 0 : i32
    return %arg0, %c0_i32, %arg1 : i32, i32, i32
  }
  func.func @transform_3(%arg0: i32, %arg1: i32) -> (i32, i32, i32) {
    %c0_i32 = arith.constant 0 : i32
    %c0_i32_0 = arith.constant 0 : i32
    return %arg0, %c0_i32, %arg1 : i32, i32, i32
  }
}

module attributes {stable_mosaic.version = 11 : i64} {
  func.func @_st_onehot_kernel(%arg0: i32, %arg1: i32, %arg2: memref<2x256xf32, #tpu.memory_space<vmem>>, %arg3: memref<1x4x256xf32, #tpu.memory_space<vmem>>, %arg4: memref<1x2x256xf32, #tpu.memory_space<vmem>>, %arg5: memref<1x4x256xf32, #tpu.memory_space<vmem>>) attributes {dimension_semantics = [#tpu.dimension_semantics<parallel>, #tpu.dimension_semantics<arbitrary>], iteration_bounds = array<i64: 2, 1>, scalar_prefetch = 0 : i64, scratch_operands = 0 : i64, tpu.core_type = #tpu.core_type<tc>, window_params = [{transform_indices = @transform_0, window_bounds = array<i64: 2, 256>}, {transform_indices = @transform_1, window_bounds = array<i64: 1, 4, 256>}, {transform_indices = @transform_2, window_bounds = array<i64: 1, 2, 256>}, {transform_indices = @transform_3, window_bounds = array<i64: 1, 4, 256>}]} {
    %c0 = arith.constant 0 : index
    %c0_0 = arith.constant 0 : index
    %c0_1 = arith.constant 0 : index
    %0 = vector.load %arg3[%c0, %c0_0, %c0_1] : memref<1x4x256xf32, #tpu.memory_space<vmem>>, vector<1x4x256xf32>
    %1 = vector.shape_cast %0 : vector<1x4x256xf32> to vector<4x256xf32>
    %c0_2 = arith.constant 0 : index
    %c0_3 = arith.constant 0 : index
    %2 = vector.load %arg2[%c0_2, %c0_3] : memref<2x256xf32, #tpu.memory_space<vmem>>, vector<1x256xf32>
    %c1 = arith.constant 1 : index
    %c0_4 = arith.constant 0 : index
    %3 = vector.load %arg2[%c1, %c0_4] : memref<2x256xf32, #tpu.memory_space<vmem>>, vector<1x256xf32>
    %c0_5 = arith.constant 0 : index
    %c0_6 = arith.constant 0 : index
    %c0_7 = arith.constant 0 : index
    %4 = vector.load %arg4[%c0_5, %c0_6, %c0_7] : memref<1x2x256xf32, #tpu.memory_space<vmem>>, vector<1x2x256xf32>
    %5 = vector.shape_cast %4 : vector<1x2x256xf32> to vector<2x256xf32>
    %6 = vector.extract_strided_slice %5 {offsets = [0, 0], sizes = [1, 256], strides = [1, 1]} : vector<2x256xf32> to vector<1x256xf32>
    %7 = arith.addf %2, %6 : vector<1x256xf32>
    %cst = arith.constant 1.500000e+01 : f32
    %8 = vector.broadcast %cst : f32 to vector<1x256xf32>
    %9 = arith.divf %7, %8 : vector<1x256xf32>
    %cst_8 = arith.constant 1.500000e+01 : f32
    %10 = vector.broadcast %cst_8 : f32 to vector<1x256xf32>
    %11 = arith.mulf %9, %10 : vector<1x256xf32>
    %12 = vector.extract_strided_slice %5 {offsets = [1, 0], sizes = [1, 256], strides = [1, 1]} : vector<2x256xf32> to vector<1x256xf32>
    %13 = arith.addf %3, %12 : vector<1x256xf32>
    %cst_9 = arith.constant 1.500000e+01 : f32
    %14 = vector.broadcast %cst_9 : f32 to vector<1x256xf32>
    %15 = arith.divf %13, %14 : vector<1x256xf32>
    %cst_10 = arith.constant 1.500000e+01 : f32
    %16 = vector.broadcast %cst_10 : f32 to vector<1x256xf32>
    %17 = arith.mulf %15, %16 : vector<1x256xf32>
    %cst_11 = arith.constant 0.000000e+00 : f32
    %cst_12 = arith.constant 1.500000e+01 : f32
    %18 = vector.broadcast %cst_11 : f32 to vector<1x256xf32>
    %19 = arith.maximumf %18, %11 : vector<1x256xf32>
    %20 = vector.broadcast %cst_12 : f32 to vector<1x256xf32>
    %21 = arith.minimumf %20, %19 : vector<1x256xf32>
    %cst_13 = arith.constant 0.000000e+00 : f32
    %cst_14 = arith.constant 1.500000e+01 : f32
    %22 = vector.broadcast %cst_13 : f32 to vector<1x256xf32>
    %23 = arith.maximumf %22, %17 : vector<1x256xf32>
    %24 = vector.broadcast %cst_14 : f32 to vector<1x256xf32>
    %25 = arith.minimumf %24, %23 : vector<1x256xf32>
    %26 = math.floor %21 : vector<1x256xf32>
    %27 = math.floor %25 : vector<1x256xf32>
    %28 = arith.subf %21, %26 : vector<1x256xf32>
    %29 = arith.subf %25, %27 : vector<1x256xf32>
    %30 = arith.fptosi %26 : vector<1x256xf32> to vector<1x256xi32>
    %31 = arith.fptosi %27 : vector<1x256xf32> to vector<1x256xi32>
    %cst_15 = arith.constant 1.000000e+00 : f32
    %32 = vector.broadcast %cst_15 : f32 to vector<1x256xf32>
    %33 = arith.subf %32, %29 : vector<1x256xf32>
    %cst_16 = arith.constant 1.000000e+00 : f32
    %34 = vector.broadcast %cst_16 : f32 to vector<1x256xf32>
    %35 = arith.subf %34, %28 : vector<1x256xf32>
    %36 = arith.mulf %33, %35 : vector<1x256xf32>
    %cst_17 = arith.constant 1.000000e+00 : f32
    %37 = vector.broadcast %cst_17 : f32 to vector<1x256xf32>
    %38 = arith.subf %37, %29 : vector<1x256xf32>
    %39 = arith.mulf %38, %28 : vector<1x256xf32>
    %cst_18 = arith.constant 1.000000e+00 : f32
    %40 = vector.broadcast %cst_18 : f32 to vector<1x256xf32>
    %41 = arith.subf %40, %28 : vector<1x256xf32>
    %42 = arith.mulf %29, %41 : vector<1x256xf32>
    %43 = arith.mulf %29, %28 : vector<1x256xf32>
    %c16_i32 = arith.constant 16 : i32
    %44 = vector.broadcast %c16_i32 : i32 to vector<1x256xi32>
    %45 = arith.muli %31, %44 : vector<1x256xi32>
    %46 = arith.addi %45, %30 : vector<1x256xi32>
    %47 = tpu.iota {dimensions = array<i32: 0>} : vector<256x256xi32>
    %48 = vector.broadcast %46 : vector<1x256xi32> to vector<256x256xi32>
    %49 = arith.subi %47, %48 : vector<256x256xi32>
    %c0_i32 = arith.constant 0 : i32
    %50 = vector.broadcast %c0_i32 : i32 to vector<256x256xi32>
    %51 = arith.cmpi eq, %49, %50 : vector<256x256xi32>
    %c1_i32 = arith.constant 1 : i32
    %52 = vector.broadcast %c1_i32 : i32 to vector<256x256xi32>
    %53 = arith.cmpi eq, %49, %52 : vector<256x256xi32>
    %c16_i32_19 = arith.constant 16 : i32
    %54 = vector.broadcast %c16_i32_19 : i32 to vector<256x256xi32>
    %55 = arith.cmpi eq, %49, %54 : vector<256x256xi32>
    %c17_i32 = arith.constant 17 : i32
    %56 = vector.broadcast %c17_i32 : i32 to vector<256x256xi32>
    %57 = arith.cmpi eq, %49, %56 : vector<256x256xi32>
    %cst_20 = arith.constant 0.000000e+00 : f32
    %58 = vector.shape_cast %43 : vector<1x256xf32> to vector<1x256xf32>
    %59 = vector.broadcast %58 : vector<1x256xf32> to vector<256x256xf32>
    %60 = vector.broadcast %cst_20 : f32 to vector<256x256xf32>
    %61 = arith.select %57, %59, %60 : vector<256x256xi1>, vector<256x256xf32>
    %62 = vector.shape_cast %42 : vector<1x256xf32> to vector<1x256xf32>
    %63 = vector.broadcast %62 : vector<1x256xf32> to vector<256x256xf32>
    %64 = arith.select %55, %63, %61 : vector<256x256xi1>, vector<256x256xf32>
    %65 = vector.shape_cast %39 : vector<1x256xf32> to vector<1x256xf32>
    %66 = vector.broadcast %65 : vector<1x256xf32> to vector<256x256xf32>
    %67 = arith.select %53, %66, %64 : vector<256x256xi1>, vector<256x256xf32>
    %68 = vector.shape_cast %36 : vector<1x256xf32> to vector<1x256xf32>
    %69 = vector.broadcast %68 : vector<1x256xf32> to vector<256x256xf32>
    %70 = arith.select %51, %69, %67 : vector<256x256xi1>, vector<256x256xf32>
    %cst_21 = arith.constant dense<0.000000e+00> : vector<4x256xf32>
    %71 = tpu.matmul %1, %70, %cst_21 {dimension_numbers = #tpu.dot_dimension_numbers<[1], [0], [0], [1], [0, 0, 1, 1], [], []>} : vector<4x256xf32>, vector<256x256xf32>, vector<4x256xf32> -> vector<4x256xf32>
    %c0_22 = arith.constant 0 : index
    %c0_23 = arith.constant 0 : index
    %c0_24 = arith.constant 0 : index
    %72 = vector.load %arg5[%c0_22, %c0_23, %c0_24] : memref<1x4x256xf32, #tpu.memory_space<vmem>>, vector<1x4x256xf32>
    %73 = vector.shape_cast %72 : vector<1x4x256xf32> to vector<4x256xf32>
    %74 = vector.shape_cast %71 : vector<4x256xf32> to vector<1x4x256xf32>
    tpu.vector_store %arg5[%c0_22, %c0_23, %c0_24], %74 {strides = array<i32>} : memref<1x4x256xf32, #tpu.memory_space<vmem>>, vector<1x4x256xf32>,
    return
  }
  func.func @transform_0(%arg0: i32, %arg1: i32) -> (i32, i32) {
    %c0_i32 = arith.constant 0 : i32
    %c0_i32_0 = arith.constant 0 : i32
    return %c0_i32, %arg1 : i32, i32
  }
  func.func @transform_1(%arg0: i32, %arg1: i32) -> (i32, i32, i32) {
    %c0_i32 = arith.constant 0 : i32
    %c0_i32_0 = arith.constant 0 : i32
    %c0_i32_1 = arith.constant 0 : i32
    return %arg0, %c0_i32, %c0_i32_0 : i32, i32, i32
  }
  func.func @transform_2(%arg0: i32, %arg1: i32) -> (i32, i32, i32) {
    %c0_i32 = arith.constant 0 : i32
    %c0_i32_0 = arith.constant 0 : i32
    return %arg0, %c0_i32, %arg1 : i32, i32, i32
  }
  func.func @transform_3(%arg0: i32, %arg1: i32) -> (i32, i32, i32) {
    %c0_i32 = arith.constant 0 : i32
    %c0_i32_0 = arith.constant 0 : i32
    return %arg0, %c0_i32, %arg1 : i32, i32, i32
  }
}

</mosaic_0001>

<bundles_post_ra>
// kernel: tpu_custom_call.1
= control target key start
LH: loop header
LB: loop body
LE: loop exit
PB: predicated region body
PF: predicated region fallthrough
CT: control target
= control target key end

     0   :  { %8 = vsyncpa [#allocation3], 0  ;;  %s2253_s0 = inlined_call_operand.hbm [shape: f32[2,256], index: 0, kind: input, shape index: {}]   ;;  %s2254_s1 = inlined_call_operand.hbm [shape: f32[2,4,256], index: 1, kind: input, shape index: {}]   ;;  %s2255_s2 = inlined_call_operand.hbm [shape: f32[2,2,256], index: 2, kind: input, shape index: {}]   ;;  %s2256_s3 = inlined_call_operand.hbm [shape: f32[2,4,256], index: 3, kind: output, shape index: {}]  }
   0x1   :  { %9 = vsyncpa [#allocation6], 0 }
   0x2   :  { %11 = vsyncpa [#allocation6 + $0x1], 0 }
   0x3   :  { %12 = vsyncpa [#allocation4], 0 }
   0x4   :  { %14 = vsyncpa [#allocation4 + $0x1], 0  ;;  %s1480_s12 = smov 0   ;;  %s1482_s13 = smov 0  }
   0x5   :  { %s1484_s14 = smov 0   ;;  %s1486_s15 = smov 0  }
   0x6   :  { %s1488_s16 = smov 0   ;;  %s1490_s17 = smov 0  }
   0x7 LB: > { %s32_s18 = sadd.s32 1, %s1450_s16  ;;  %s65_s19 = sadd.s32 1, %s1442_s14  ;;  %s1454_s17 = sphi %s1490_s17, %s20_s17   ;;  %s1450_s16 = sphi %s1488_s16, %s2276_s16   ;;  %s1446_s15 = sphi %s1486_s15, %s2275_s15   ;;  %s1442_s14 = sphi %s1484_s14, %s2274_s14   ;;  %s1438_s13 = sphi %s1482_s13, %s2273_s13   ;;  %s1434_s12 = sphi %s1480_s12, %s2272_s12  }
   0x8   : > { %p34_p0 = scmp.ge.s32.totalorder %s32_s18, 2  ;;  %p72_p1 = scmp.ne.s32.totalorder %s1442_s14, %s1438_s13 }
   0x9   : > { %p73_p2 = scmp.eq.s32.totalorder %s1454_s17, 0  ;;  %p1235_p5 = scmp.lt.s32.totalorder %s1454_s17, 2 }
   0xa   : > { %s2278_s18 = smov (%p34_p0, %s32_s18), 0  ;;  %s172_s21 = sand.u32 1, %s1454_s17  }
   0xb   : > { %p74_p4 = por %p73_p2, %p72_p1  ;;  %s62_s20 = ssub.s32 %s1450_s16, %s2278_s18 }
   0xc   : > { %p63_p6 = scmp.eq.s32.totalorder %s62_s20, 0  ;;  %s174_s22 = sand.u32 1, %s1442_s14  }
   0xd   : > { %s1202_s23 = sshll.u32 %s1450_s16, 7  ;;  %s1185_s25 = sshll.u32 %s174_s22, 3 }
   0xe   : > { %s1528_s24 = scalar_select %p63_p6, %s1442_s14, %s65_s19  }
   0xf   : > { %s182_s28 = scalar_lea.hbm %s2254_s1, %s1202_s23  ;;  %p1533_p7 = pnand %p1235_p5, %p74_p4 }
  0x10   : > { %s176_s30 = scalar_lea.vmem [#allocation5], %s1185_s25  ;;  %s1537_s5 = sshll.u32 %s174_s22, 2 }
  0x11   : > { %s184_s4 = sshll.u32 %s176_s30, 4  ;;  %s1539_s6 = scalar_lea.sflag [#allocation6], %s172_s21  ;;  %s185_s4 = int_to_ptr.vmem [resolvable:$true] %s184_s4 }
  0x12   : > { %p1290_p8 = pneg %p1533_p7  ;;  %s1301_s7 = scalar_lea.vmem %s185_s4, 128 }
  0x13   : > { %p1302_p9 = scmp.ne.s32.totalorder %s185_s4, %s1301_s7  ;;  %s1456_s8 = smov [#allocation5]  }
  0x14   : > { %s1306_s9 = sshll.u32 %s1456_s8, 4  ;;  %s1307_s9 = int_to_ptr.vmem [resolvable:$false] %s1306_s9 }
  0x15   : > { %p1304_p10 = pnand %p1302_p9, %p1290_p8  ;;  %s1308_s10 = scalar_lea.vmem %s1307_s9, 256 }
  0x16   : > { %p1309_p12 = scmp.lt.s32.totalorder %s185_s4, %s1307_s9  ;;  %p1310_p13 = scmp.lt.s32.totalorder %s1308_s10, %s1301_s7 }
  0x17   : > { %p1305_p11 = pneg %p1304_p10 }
  0x18   : > { %p1311_p0 = por %p1310_p13, %p1309_p12 }
  0x1a   : > { %p1312_p2 = pnand %p1311_p0, %p1305_p11 }
  0x1c   : > { %1315 = shalt.err (!%p1312_p2)
}
  0x1d   : > { %1226 = dma.hbm_to_vmem [thread:$0]  (!%p1533_p7), %s182_s28, 128, %s185_s4, %s1539_s6  }
  0x1e   : > { %s1550_s11 = sadd.s32 4294967295, %s1454_s17   ;;  %s1181_s19 = sadd.s32 4294967294, %s1454_s17  }
  0x1f   : > { %p78_p4 = scmp.ne.s32.totalorder %s1438_s13, %s1434_s12  ;;  %p2258_p5 = scmp.eq.s32.totalorder %s1550_s11, 0 }
  0x20   : > { %p132_p6 = scmp.eq.s32.totalorder %s1550_s11, 1  ;;  %p138_p9 = scmp.eq.s32.totalorder %s1181_s19, 1 }
  0x21   : > { %p1559_p10 = por %p2258_p5, %p78_p4  ;;  %p1182_p11 = scmp.ge.s32.totalorder %s1454_s17, 1 }
  0x22   : > { %p1567_p12 = por %p132_p6, %p72_p1  ;;  %p1571_p13 = por %p138_p9, %p78_p4 }
  0x23   : > { %s2261_s20 = scalar_select %p1559_p10, 1, 0 }
  0x24   : > { %s2262_s21 = scalar_select %p1567_p12, 1, 0 }
  0x25   : > { %s2263_s22 = scalar_select %p1571_p13, 1, 0 }
  0x26   : > { %p145_p0 = scmp.lt.s32.totalorder %s1454_s17, 3  ;;  %s1457_s25 = smov [#allocation2]  }
  0x27   : > { %s161_s26 = sshll.u32 %s1457_s25, 4  ;;  %s1203_s27 = sshll.u32 %s1450_s16, 6  ;;  %s1586_s26 = int_to_ptr.vmem [resolvable:$true] %s161_s26 }
  0x28   : > { %p1576_p2 = pnand %p1182_p11, %p145_p0  ;;  %s203_s4 = scalar_lea.hbm %s2255_s2, %s1203_s27 }
  0x29   : > { %s195_s7 = scalar_lea.vmem [#allocation7], %s1537_s5  ;;  %s1458_s19 = smov [#allocation7]  }
  0x2a   : > { %p1219_p3 = pneg %p1576_p2  ;;  %s205_s8 = sshll.u32 %s195_s7, 4  ;;  %s206_s8 = int_to_ptr.vmem [resolvable:$true] %s205_s8 }
  0x2b   : > { %s1329_s10 = scalar_lea.vmem %s206_s8, 64  ;;  %s1334_s25 = sshll.u32 %s1458_s19, 4  ;;  %s1335_s25 = int_to_ptr.vmem [resolvable:$false] %s1334_s25 }
  0x2c   : > { %p1591_p1 = pnand %p1219_p3, %p2258_p5  ;;  %p1330_p4 = scmp.ne.s32.totalorder %s206_s8, %s1329_s10 }
  0x2d   : > { %s1336_s27 = scalar_lea.vmem %s1335_s25, 128  ;;  %p1337_p11 = scmp.lt.s32.totalorder %s206_s8, %s1335_s25 }
  0x2e   : > { %p1332_p6 = pnand %p1330_p4, %p1290_p8  ;;  %p1338_p0 = scmp.lt.s32.totalorder %s1336_s27, %s1329_s10 }
  0x30   : > { %p1333_p9 = pneg %p1332_p6  ;;  %p1339_p13 = por %p1338_p0, %p1337_p11 }
  0x32   : > { %p1340_p12 = pnand %p1339_p13, %p1333_p9 }
  0x34   : > { %1343 = shalt.err (!%p1340_p12)
}
  0x35   : > { %1229 = dma.hbm_to_vmem [thread:$0]  (!%p1533_p7), %s203_s4, 64, %s206_s8, %s1539_s6  }
  0x36   : > { %p1346_p3 = pneg %p1591_p1  ;;  %s1355_s5 = scalar_lea.vmem %s1586_s26, 64 }
  0x37   : > { %p1356_p8 = scmp.ne.s32.totalorder %s1586_s26, %s1355_s5  ;;  %p1363_p5 = scmp.lt.s32.totalorder %s1586_s26, %s1586_s26 }
  0x38   : > { %p1364_p10 = scmp.lt.s32.totalorder %s1355_s5, %s1355_s5 }
  0x39   : > { %p1358_p4 = pnand %p1356_p8, %p1346_p3 }
  0x3a   : > { %p1365_p11 = por %p1364_p10, %p1363_p5 }
  0x3b   : > { %p1359_p6 = pneg %p1358_p4 }
  0x3d   : > { %p1366_p13 = pnand %p1365_p11, %p1359_p6 }
  0x3f   : > { %1369 = shalt.err (!%p1366_p13)
}
  0x40   : > { %1222 = dma.hbm_to_vmem [thread:$0]  (!%p1591_p1), %s2253_s0, 64, %s1586_s26, [#allocation3]  }
  0x41   : > { %214 = sbr.rel (%p1576_p2) target bundleno = 462 (0x1ce), region = 32  ;;  %p2266_p7 = scmp.eq.s32.totalorder (!%p1576_p2), %s1550_s11, 0 }
  0x46   : > { %1421 = dma.done.wait (%p2266_p7), [#allocation3], 64   ;;  %p2267_p12 = pmov %p2266_p7 }
  0x47   : > { %s220_s6 = sand.u32 1, %s1550_s11   ;;  %s1621_s30 = sand.u32 1, %s1438_s13  }
  0x48   : > { %1423 = vsyncadd (%p2267_p12), [#allocation3], 4294967232  ;;  %s1193_s4 = sshll.u32 %s1621_s30, 3  ;;  %s221_s7 = scalar_lea.sflag [#allocation6], %s220_s6 }
  0x49   : > { %s1626_s26 = scalar_lea.vmem [#allocation5], %s1193_s4  ;;  %p2268_p5 = scmp.ne.s32.totalorder %s2261_s20, 0 }
  0x4b   : > { %1425 = dma.done.wait (%p2268_p5), %s221_s7, 192  }
  0x4c   : > { %1427 = vsyncadd (%p2268_p5), %s221_s7, 4294967104  ;;  %s1194_s23 = sshll.u32 %s1621_s30, 2  ;;  %v265_v0 = vld [vmem:[#allocation2] ss:$2 sm:$0x3]  ;;  %v305_v5 = vlaneseq  ;;  %s1204_s11 = sshll.u32 %s1446_s15, 7 }
  0x4d   : > { %v267_v1 = vld [vmem:[#allocation2 + $0x1] ss:$2 sm:$0x3]  ;;  %s233_s8 = scalar_lea.vmem [#allocation7], %s1194_s23  ;;  %s260_s20 = scalar_lea.vmem [#allocation8], %s1193_s4 }
  0x4e   : > { %v1196_v2 = vld.sshfl [vmem:[%s233_s8] sm:$0x33 pattern:$0x75316420]  ;;  %v1633_v10 = vshrl.u32 %v305_v5, 7  ;;  %s1062_s9 = sshll.u32 %s260_s20, 4  ;;  %s1060_s25 = scalar_lea.hbm %s2256_s3, %s1204_s11  ;;  %s1063_s9 = int_to_ptr.vmem [resolvable:$true] %s1062_s9 }
  0x4f   : > { %v278_v3 = vadd.f32 %v1196_v2, %v265_v0  ;;  %v282_v4 = vcombine.high %v1196_v2, %v1196_v2  ;;  %s1046_s27 = scalar_lea.sflag [#allocation4], %s1621_s30  ;;  %s1370_s5 = scalar_lea.vmem %s1063_s9, 128 }
  0x50   : > { %v340_v15 = vsub.s32 0, %v1633_v10  ;;  %v344_v16 = vsub.s32 1, %v1633_v10  ;;  %v321_v19 = vadd.s32 120, %v1633_v10  ;;  %v320_v20 = vadd.s32 112, %v1633_v10  ;;  %p1371_p10 = scmp.ne.s32.totalorder %s1063_s9, %s1370_s5  ;;  %p2269_p2 = scmp.ne.s32.totalorder %s2262_s21, 0 }
  0x51   : > { %v280_v6 = vmul.f32 0.06666667, %v278_v3  ;;  %v284_v7 = vadd.f32 %v282_v4, %v267_v1  ;;  %v319_v21 = vadd.s32 104, %v1633_v10  ;;  %v318_v22 = vadd.s32 96, %v1633_v10  ;;  %s1459_s29 = smov [#allocation8]  }
  0x52   : > { %v1642_v23 = vadd.s32 88, %v1633_v10  ;;  %v1645_v24 = vadd.s32 80, %v1633_v10  ;;  %v1648_v28 = vadd.s32 72, %v1633_v10  ;;  %v1651_v29 = vadd.s32 64, %v1633_v10  ;;  %p1372_p1 = pnand %p1371_p10, %p2269_p2  ;;  %s1374_s28 = sshll.u32 %s1459_s29, 4  ;;  %s1375_s28 = int_to_ptr.vmem [resolvable:$false] %s1374_s28 }
  0x53   : > { %v281_v8 = vmul.f32 15.0, %v280_v6  ;;  %v285_v9 = vmul.f32 0.06666667, %v284_v7  ;;  %v1654_v30 = vadd.s32 56, %v1633_v10  ;;  %v1657_v31 = vadd.s32 48, %v1633_v10  ;;  %s1376_s15 = scalar_lea.vmem %s1375_s28, 256  ;;  %p1377_p0 = scmp.lt.s32.totalorder %s1063_s9, %s1375_s28 }
  0x54   : > { %v1660_v32 = vadd.s32 40, %v1633_v10  ;;  %v1663_v36 = vadd.s32 32, %v1633_v10  ;;  %v1666_v37 = vadd.s32 24, %v1633_v10  ;;  %v1669_v38 = vadd.s32 16, %v1633_v10  ;;  %p1373_p9 = pneg %p1372_p1  ;;  %p1378_p3 = scmp.lt.s32.totalorder %s1376_s15, %s1370_s5 }
  0x55   : > { %v286_v11 = vmul.f32 15.0, %v285_v9  ;;  %v287_v12 = vmax.f32 %v281_v8, 0.0  ;;  %v1672_v39 = vadd.s32 8, %v1633_v10  ;;  %v1675_v40 = vadd.s32 248, %v1633_v10 }
  0x56   : > { %v1678_v44 = vadd.s32 240, %v1633_v10  ;;  %v1681_v47 = vadd.s32 232, %v1633_v10  ;;  %v1684_v48 = vadd.s32 224, %v1633_v10  ;;  %v1687_v51 = vadd.s32 216, %v1633_v10  ;;  %p1379_p8 = por %p1378_p3, %p1377_p0 }
  0x57   : > { %v288_v13 = vmin.f32 %v287_v12, 15.0  ;;  %v289_v14 = vmax.f32 %v286_v11, 0.0  ;;  %v1690_v52 = vadd.s32 208, %v1633_v10  ;;  %v1693_v54 = vadd.s32 200, %v1633_v10 }
  0x58   : > { %v1696_v55 = vadd.s32 192, %v1633_v10  ;;  %v1699_v56 = vadd.s32 184, %v1633_v10  ;;  %v1702_v58 = vadd.s32 176, %v1633_v10  ;;  %v1705_v59 = vadd.s32 168, %v1633_v10  ;;  %p1380_p4 = pnand %p1379_p8, %p1373_p9 }
  0x59   : > { %v290_v17 = vmin.f32 %v289_v14, 15.0  ;;  %v291_v18 = vfloor.f32 %v288_v13  ;;  %v1708_v60 = vadd.s32 160, %v1633_v10  ;;  %v1717_v0 = vadd.s32 152, %v1633_v10 }
  0x5a   : > { %v1734_v8 = vadd.s32 144, %v1633_v10 }
  0x5b   : > { %v292_v25 = vfloor.f32 %v290_v17  ;;  %v293_v26 = vsub.f32 %v288_v13, %v291_v18  ;;  %v1205_v27 = vtrunc.f32 %v291_v18 }
  0x5d   : > { %v294_v33 = vsub.f32 %v290_v17, %v292_v25  ;;  %v1207_v34 = vtrunc.f32 %v292_v25  ;;  %v298_v35 = vsub.f32 1.0, %v293_v26  ;;  %v1206_v41 = vcvt.f32.s32 %v1205_v27 }
  0x5f   : > { %v1208_v42 = vcvt.f32.s32 %v1207_v34  ;;  %v297_v43 = vsub.f32 1.0, %v294_v33  ;;  %v301_v45 = vmul.f32 %v298_v35, %v294_v33  ;;  %v302_v46 = vmul.f32 %v294_v33, %v293_v26 }
  0x61   : > { %v300_v49 = vmul.f32 %v297_v43, %v293_v26  ;;  %v303_v50 = vmul.u32 16, %v1208_v42  ;;  %v299_v53 = vmul.f32 %v298_v35, %v297_v43  ;;  %v1710_v61 = vrot.slane %v302_v46, %v340_v15 }
  0x62   : > { %v1712_v62 = vrot.slane %v302_v46, %v344_v16  ;;  %v1714_v63 = vrot.slane %v301_v45, %v340_v15  ;;  %v1723_v3 = vrot.slane %v301_v45, %v344_v16 }
  0x63   : > { %v304_v57 = vadd.s32 %v1206_v41, %v303_v50  ;;  %v1725_v4 = vrot.slane %v300_v49, %v340_v15  ;;  %v1727_v5 = vrot.slane %v300_v49, %v344_v16  ;;  %v1729_v6 = vrot.slane %v299_v53, %v340_v15 }
  0x64   : > { %v1731_v7 = vrot.slane %v299_v53, %v344_v16 }
  0x65   : > { %v1719_v1 = vrot.slane %v304_v57, %v340_v15  ;;  %v1721_v2 = vrot.slane %v304_v57, %v344_v16 }
  0x67   : > { %v377_v9 = vsub.s32 %v321_v19, %v1721_v2  ;;  %v376_v11 = vsub.s32 %v321_v19, %v1719_v1  ;;  %v375_v12 = vsub.s32 %v320_v20, %v1721_v2  ;;  %v374_v13 = vsub.s32 %v320_v20, %v1719_v1 }
  0x68   : > { %v373_v14 = vsub.s32 %v319_v21, %v1721_v2  ;;  %v372_v17 = vsub.s32 %v319_v21, %v1719_v1  ;;  %v1743_v15 = vsub.s32 %v318_v22, %v1721_v2  ;;  %v1746_v16 = vsub.s32 %v318_v22, %v1719_v1 }
  0x69   : > { %vm441_vm0 = vcmp.eq.s32.totalorder %v377_v9, 0  ;;  %vm505_vm1 = vcmp.eq.s32.totalorder %v377_v9, 1  ;;  %vm569_vm2 = vcmp.eq.s32.totalorder %v377_v9, 16  ;;  %vm633_vm3 = vcmp.eq.s32.totalorder %v377_v9, 17 }
  0x6a   : > { %v708_v18 = vsel %vm633_vm3, %v1712_v62, 0.0  ;;  %vm440_vm4 = vcmp.eq.s32.totalorder %v376_v11, 0  ;;  %vm504_vm5 = vcmp.eq.s32.totalorder %v376_v11, 1  ;;  %vm568_vm6 = vcmp.eq.s32.totalorder %v376_v11, 16 }
  0x6b   : > { %v783_v19 = vsel %vm569_vm2, %v1723_v3, %v708_v18  ;;  %vm632_vm7 = vcmp.eq.s32.totalorder %v376_v11, 17  ;;  %vm439_vm8 = vcmp.eq.s32.totalorder %v375_v12, 0  ;;  %vm503_vm9 = vcmp.eq.s32.totalorder %v375_v12, 1 }
  0x6c   : > { %v858_v20 = vsel %vm505_vm1, %v1727_v5, %v783_v19  ;;  %v707_v21 = vsel %vm632_vm7, %v1710_v61, 0.0  ;;  %vm567_vm10 = vcmp.eq.s32.totalorder %v375_v12, 16  ;;  %vm631_vm11 = vcmp.eq.s32.totalorder %v375_v12, 17 }
  0x6d   : > { %v933_v22 = vsel %vm441_vm0, %v1731_v7, %v858_v20  ;;  %v782_v25 = vsel %vm568_vm6, %v1714_v63, %v707_v21  ;;  %v706_v26 = vsel %vm631_vm11, %v1712_v62, 0.0  ;;  %vm438_vm12 = vcmp.eq.s32.totalorder %v374_v13, 0 }
  0x6e   : > { %969 = vmatprep.subr.mxu0 %v933_v22  ;;  %v857_v27 = vsel %vm504_vm5, %v1725_v4, %v782_v25  ;;  %v781_v33 = vsel %vm567_vm10, %v1723_v3, %v706_v26  ;;  %vm502_vm13 = vcmp.eq.s32.totalorder %v374_v13, 1  ;;  %vm566_vm14 = vcmp.eq.s32.totalorder %v374_v13, 16 }
  0x6f   : > { %v932_v34 = vsel %vm440_vm4, %v1729_v6, %v857_v27  ;;  %v856_v35 = vsel %vm503_vm9, %v1727_v5, %v781_v33  ;;  %vm630_vm15 = vcmp.eq.s32.totalorder %v374_v13, 17  ;;  %vm437_vm1 = vcmp.eq.s32.totalorder %v373_v14, 0 }
  0x70   : > { %970 = vmatpush1.msra.mxu0 %v932_v34  ;;  %v931_v41 = vsel %vm439_vm8, %v1731_v7, %v856_v35  ;;  %v705_v42 = vsel %vm630_vm15, %v1710_v61, 0.0  ;;  %vm501_vm0 = vcmp.eq.s32.totalorder %v373_v14, 1  ;;  %vm565_vm2 = vcmp.eq.s32.totalorder %v373_v14, 16 }
  0x71   : > { %971 = vmatprep.subr.mxu0 %v931_v41  ;;  %v780_v43 = vsel %vm566_vm14, %v1714_v63, %v705_v42  ;;  %vm629_vm3 = vcmp.eq.s32.totalorder %v373_v14, 17  ;;  %vm436_vm5 = vcmp.eq.s32.totalorder %v372_v17, 0  ;;  %vm500_vm6 = vcmp.eq.s32.totalorder %v372_v17, 1 }
  0x72   : > { %v855_v45 = vsel %vm502_vm13, %v1725_v4, %v780_v43  ;;  %v704_v46 = vsel %vm629_vm3, %v1712_v62, 0.0  ;;  %vm564_vm4 = vcmp.eq.s32.totalorder %v372_v17, 16  ;;  %vm628_vm7 = vcmp.eq.s32.totalorder %v372_v17, 17 }
  0x73   : > { %v930_v49 = vsel %vm438_vm12, %v1729_v6, %v855_v45  ;;  %v779_v50 = vsel %vm565_vm2, %v1723_v3, %v704_v46  ;;  %v703_v53 = vsel %vm628_vm7, %v1710_v61, 0.0  ;;  %vm435_vm8 = vcmp.eq.s32.totalorder %v1743_v15, 0 }
  0x74   : > { %972 = vmatpush1.msra.mxu0 %v930_v49  ;;  %v854_v57 = vsel %vm501_vm0, %v1727_v5, %v779_v50  ;;  %v778_v9 = vsel %vm564_vm4, %v1714_v63, %v703_v53  ;;  %vm499_vm9 = vcmp.eq.s32.totalorder %v1743_v15, 1  ;;  %vm563_vm10 = vcmp.eq.s32.totalorder %v1743_v15, 16 }
  0x75   : > { %v929_v11 = vsel %vm437_vm1, %v1731_v7, %v854_v57  ;;  %v853_v12 = vsel %vm500_vm6, %v1725_v4, %v778_v9  ;;  %vm627_vm11 = vcmp.eq.s32.totalorder %v1743_v15, 17  ;;  %vm434_vm12 = vcmp.eq.s32.totalorder %v1746_v16, 0 }
  0x76   : > { %973 = vmatprep.subr.mxu0 %v929_v11  ;;  %v928_v13 = vsel %vm436_vm5, %v1729_v6, %v853_v12  ;;  %v702_v18 = vsel %vm627_vm11, %v1712_v62, 0.0  ;;  %vm498_vm13 = vcmp.eq.s32.totalorder %v1746_v16, 1  ;;  %vm562_vm14 = vcmp.eq.s32.totalorder %v1746_v16, 16 }
  0x77   : > { %974 = vmatpush1.msra.mxu0 %v928_v13  ;;  %v777_v14 = vsel %vm563_vm10, %v1723_v3, %v702_v18  ;;  %vm626_vm15 = vcmp.eq.s32.totalorder %v1746_v16, 17  ;;  %v369_v19 = vsub.s32 %v1642_v23, %v1721_v2  ;;  %v368_v20 = vsub.s32 %v1642_v23, %v1719_v1 }
  0x78   : > { %v852_v17 = vsel %vm499_vm9, %v1727_v5, %v777_v14  ;;  %v701_v21 = vsel %vm626_vm15, %v1710_v61, 0.0  ;;  %v367_v22 = vsub.s32 %v1645_v24, %v1721_v2  ;;  %v366_v25 = vsub.s32 %v1645_v24, %v1719_v1 }
  0x79   : > { %v927_v26 = vsel %vm435_vm8, %v1731_v7, %v852_v17  ;;  %v776_v27 = vsel %vm562_vm14, %v1714_v63, %v701_v21  ;;  %vm433_vm1 = vcmp.eq.s32.totalorder %v369_v19, 0  ;;  %vm497_vm0 = vcmp.eq.s32.totalorder %v369_v19, 1 }
  0x7a   : > { %975 = vmatprep.subr.mxu0 %v927_v26  ;;  %v851_v23 = vsel %vm498_vm13, %v1725_v4, %v776_v27  ;;  %vm561_vm2 = vcmp.eq.s32.totalorder %v369_v19, 16  ;;  %vm625_vm3 = vcmp.eq.s32.totalorder %v369_v19, 17  ;;  %vm432_vm5 = vcmp.eq.s32.totalorder %v368_v20, 0 }
  0x7b   : > { %v926_v24 = vsel %vm434_vm12, %v1729_v6, %v851_v23  ;;  %v700_v33 = vsel %vm625_vm3, %v1712_v62, 0.0  ;;  %vm496_vm6 = vcmp.eq.s32.totalorder %v368_v20, 1  ;;  %vm560_vm4 = vcmp.eq.s32.totalorder %v368_v20, 16 }
  0x7c   : > { %976 = vmatpush1.msra.mxu0 %v926_v24  ;;  %v775_v15 = vsel %vm561_vm2, %v1723_v3, %v700_v33  ;;  %vm624_vm7 = vcmp.eq.s32.totalorder %v368_v20, 17  ;;  %vm431_vm8 = vcmp.eq.s32.totalorder %v367_v22, 0  ;;  %vm495_vm9 = vcmp.eq.s32.totalorder %v367_v22, 1 }
  0x7d   : > { %v850_v34 = vsel %vm497_vm0, %v1727_v5, %v775_v15  ;;  %v699_v35 = vsel %vm624_vm7, %v1710_v61, 0.0  ;;  %vm559_vm10 = vcmp.eq.s32.totalorder %v367_v22, 16  ;;  %vm623_vm11 = vcmp.eq.s32.totalorder %v367_v22, 17 }
  0x7e   : > { %v925_v16 = vsel %vm433_vm1, %v1731_v7, %v850_v34  ;;  %v774_v41 = vsel %vm560_vm4, %v1714_v63, %v699_v35  ;;  %v698_v42 = vsel %vm623_vm11, %v1712_v62, 0.0  ;;  %vm430_vm12 = vcmp.eq.s32.totalorder %v366_v25, 0 }
  0x7f   : > { %977 = vmatprep.subr.mxu0 %v925_v16  ;;  %v849_v43 = vsel %vm496_vm6, %v1725_v4, %v774_v41  ;;  %v773_v45 = vsel %vm559_vm10, %v1723_v3, %v698_v42  ;;  %vm494_vm13 = vcmp.eq.s32.totalorder %v366_v25, 1  ;;  %vm558_vm14 = vcmp.eq.s32.totalorder %v366_v25, 16 }
  0x80   : > { %v924_v46 = vsel %vm432_vm5, %v1729_v6, %v849_v43  ;;  %v848_v49 = vsel %vm495_vm9, %v1727_v5, %v773_v45  ;;  %vm622_vm15 = vcmp.eq.s32.totalorder %v366_v25, 17  ;;  %v365_v50 = vsub.s32 %v1648_v28, %v1721_v2 }
  0x81   : > { %978 = vmatpush1.msra.mxu0 %v924_v46  ;;  %v923_v53 = vsel %vm431_vm8, %v1731_v7, %v848_v49  ;;  %v697_v57 = vsel %vm622_vm15, %v1710_v61, 0.0  ;;  %v364_v9 = vsub.s32 %v1648_v28, %v1719_v1  ;;  %v363_v11 = vsub.s32 %v1651_v29, %v1721_v2 }
  0x82   : > { %979 = vmatprep.subr.mxu0 %v923_v53  ;;  %v772_v12 = vsel %vm558_vm14, %v1714_v63, %v697_v57  ;;  %vm429_vm1 = vcmp.eq.s32.totalorder %v365_v50, 0  ;;  %vm493_vm0 = vcmp.eq.s32.totalorder %v365_v50, 1  ;;  %vm557_vm2 = vcmp.eq.s32.totalorder %v365_v50, 16 }
  0x83   : > { %v847_v13 = vsel %vm494_vm13, %v1725_v4, %v772_v12  ;;  %vm621_vm3 = vcmp.eq.s32.totalorder %v365_v50, 17  ;;  %vm428_vm5 = vcmp.eq.s32.totalorder %v364_v9, 0  ;;  %vm492_vm6 = vcmp.eq.s32.totalorder %v364_v9, 1 }
  0x84   : > { %v922_v18 = vsel %vm430_vm12, %v1729_v6, %v847_v13  ;;  %v696_v28 = vsel %vm621_vm3, %v1712_v62, 0.0  ;;  %vm556_vm4 = vcmp.eq.s32.totalorder %v364_v9, 16  ;;  %vm620_vm7 = vcmp.eq.s32.totalorder %v364_v9, 17 }
  0x85   : > { %980 = vmatpush1.msra.mxu0 %v922_v18  ;;  %v771_v14 = vsel %vm557_vm2, %v1723_v3, %v696_v28  ;;  %v695_v19 = vsel %vm620_vm7, %v1710_v61, 0.0  ;;  %vm427_vm8 = vcmp.eq.s32.totalorder %v363_v11, 0  ;;  %vm491_vm9 = vcmp.eq.s32.totalorder %v363_v11, 1 }
  0x86   : > { %v846_v20 = vsel %vm493_vm0, %v1727_v5, %v771_v14  ;;  %v770_v17 = vsel %vm556_vm4, %v1714_v63, %v695_v19  ;;  %vm555_vm10 = vcmp.eq.s32.totalorder %v363_v11, 16  ;;  %vm619_vm11 = vcmp.eq.s32.totalorder %v363_v11, 17 }
  0x87   : > { %v921_v21 = vsel %vm429_vm1, %v1731_v7, %v846_v20  ;;  %v845_v22 = vsel %vm492_vm6, %v1725_v4, %v770_v17  ;;  %v694_v25 = vsel %vm619_vm11, %v1712_v62, 0.0  ;;  %v362_v26 = vsub.s32 %v1651_v29, %v1719_v1 }
  0x88   : > { %981 = vmatprep.subr.mxu0 %v921_v21  ;;  %v920_v27 = vsel %vm428_vm5, %v1729_v6, %v845_v22  ;;  %v769_v23 = vsel %vm555_vm10, %v1723_v3, %v694_v25  ;;  %v361_v24 = vsub.s32 %v1654_v30, %v1721_v2  ;;  %v360_v33 = vsub.s32 %v1654_v30, %v1719_v1 }
  0x89   : > { %982 = vmatpush1.msra.mxu0 %v920_v27  ;;  %v844_v15 = vsel %vm491_vm9, %v1727_v5, %v769_v23  ;;  %vm426_vm12 = vcmp.eq.s32.totalorder %v362_v26, 0  ;;  %vm490_vm13 = vcmp.eq.s32.totalorder %v362_v26, 1  ;;  %vm554_vm14 = vcmp.eq.s32.totalorder %v362_v26, 16 }
  0x8a   : > { %v919_v29 = vsel %vm427_vm8, %v1731_v7, %v844_v15  ;;  %vm618_vm15 = vcmp.eq.s32.totalorder %v362_v26, 17  ;;  %vm425_vm1 = vcmp.eq.s32.totalorder %v361_v24, 0  ;;  %vm489_vm0 = vcmp.eq.s32.totalorder %v361_v24, 1 }
  0x8b   : > { %983 = vmatprep.subr.mxu0 %v919_v29  ;;  %v693_v34 = vsel %vm618_vm15, %v1710_v61, 0.0  ;;  %vm553_vm2 = vcmp.eq.s32.totalorder %v361_v24, 16  ;;  %vm617_vm3 = vcmp.eq.s32.totalorder %v361_v24, 17  ;;  %vm424_vm5 = vcmp.eq.s32.totalorder %v360_v33, 0 }
  0x8c   : > { %v768_v30 = vsel %vm554_vm14, %v1714_v63, %v693_v34  ;;  %v692_v35 = vsel %vm617_vm3, %v1712_v62, 0.0  ;;  %vm488_vm6 = vcmp.eq.s32.totalorder %v360_v33, 1  ;;  %vm552_vm4 = vcmp.eq.s32.totalorder %v360_v33, 16 }
  0x8d   : > { %v843_v16 = vsel %vm490_vm13, %v1725_v4, %v768_v30  ;;  %v767_v41 = vsel %vm553_vm2, %v1723_v3, %v692_v35  ;;  %vm616_vm7 = vcmp.eq.s32.totalorder %v360_v33, 17  ;;  %v359_v42 = vsub.s32 %v1657_v31, %v1721_v2 }
  0x8e   : > { %v918_v43 = vsel %vm426_vm12, %v1729_v6, %v843_v16  ;;  %v842_v45 = vsel %vm489_vm0, %v1727_v5, %v767_v41  ;;  %v691_v46 = vsel %vm616_vm7, %v1710_v61, 0.0  ;;  %v358_v49 = vsub.s32 %v1657_v31, %v1719_v1 }
  0x8f   : > { %984 = vmatpush1.msra.mxu0 %v918_v43  ;;  %v917_v50 = vsel %vm425_vm1, %v1731_v7, %v842_v45  ;;  %v766_v53 = vsel %vm552_vm4, %v1714_v63, %v691_v46  ;;  %vm423_vm8 = vcmp.eq.s32.totalorder %v359_v42, 0  ;;  %vm487_vm9 = vcmp.eq.s32.totalorder %v359_v42, 1 }
  0x90   : > { %985 = vmatprep.subr.mxu0 %v917_v50  ;;  %v841_v57 = vsel %vm488_vm6, %v1725_v4, %v766_v53  ;;  %vm551_vm10 = vcmp.eq.s32.totalorder %v359_v42, 16  ;;  %vm615_vm11 = vcmp.eq.s32.totalorder %v359_v42, 17  ;;  %vm422_vm12 = vcmp.eq.s32.totalorder %v358_v49, 0 }
  0x91   : > { %v916_v9 = vsel %vm424_vm5, %v1729_v6, %v841_v57  ;;  %v690_v31 = vsel %vm615_vm11, %v1712_v62, 0.0  ;;  %vm486_vm13 = vcmp.eq.s32.totalorder %v358_v49, 1  ;;  %vm550_vm14 = vcmp.eq.s32.totalorder %v358_v49, 16 }
  0x92   : > { %986 = vmatpush1.msra.mxu0 %v916_v9  ;;  %v765_v11 = vsel %vm551_vm10, %v1723_v3, %v690_v31  ;;  %vm614_vm15 = vcmp.eq.s32.totalorder %v358_v49, 17  ;;  %v357_v12 = vsub.s32 %v1660_v32, %v1721_v2  ;;  %v356_v13 = vsub.s32 %v1660_v32, %v1719_v1 }
  0x93   : > { %v840_v18 = vsel %vm487_vm9, %v1727_v5, %v765_v11  ;;  %v689_v28 = vsel %vm614_vm15, %v1710_v61, 0.0  ;;  %v355_v14 = vsub.s32 %v1663_v36, %v1721_v2  ;;  %v354_v19 = vsub.s32 %v1663_v36, %v1719_v1 }
  0x94   : > { %v915_v20 = vsel %vm423_vm8, %v1731_v7, %v840_v18  ;;  %v764_v17 = vsel %vm550_vm14, %v1714_v63, %v689_v28  ;;  %vm421_vm1 = vcmp.eq.s32.totalorder %v357_v12, 0  ;;  %vm485_vm0 = vcmp.eq.s32.totalorder %v357_v12, 1 }
  0x95   : > { %987 = vmatprep.subr.mxu0 %v915_v20  ;;  %v839_v32 = vsel %vm486_vm13, %v1725_v4, %v764_v17  ;;  %vm549_vm2 = vcmp.eq.s32.totalorder %v357_v12, 16  ;;  %vm613_vm3 = vcmp.eq.s32.totalorder %v357_v12, 17  ;;  %vm420_vm5 = vcmp.eq.s32.totalorder %v356_v13, 0 }
  0x96   : > { %v914_v21 = vsel %vm422_vm12, %v1729_v6, %v839_v32  ;;  %v688_v22 = vsel %vm613_vm3, %v1712_v62, 0.0  ;;  %vm484_vm6 = vcmp.eq.s32.totalorder %v356_v13, 1  ;;  %vm548_vm4 = vcmp.eq.s32.totalorder %v356_v13, 16 }
  0x97   : > { %988 = vmatpush1.msra.mxu0 %v914_v21  ;;  %v763_v36 = vsel %vm549_vm2, %v1723_v3, %v688_v22  ;;  %vm612_vm7 = vcmp.eq.s32.totalorder %v356_v13, 17  ;;  %vm419_vm8 = vcmp.eq.s32.totalorder %v355_v14, 0  ;;  %vm483_vm9 = vcmp.eq.s32.totalorder %v355_v14, 1 }
  0x98   : > { %v838_v25 = vsel %vm485_vm0, %v1727_v5, %v763_v36  ;;  %v687_v26 = vsel %vm612_vm7, %v1710_v61, 0.0  ;;  %vm547_vm10 = vcmp.eq.s32.totalorder %v355_v14, 16  ;;  %vm611_vm11 = vcmp.eq.s32.totalorder %v355_v14, 17 }
  0x99   : > { %v913_v27 = vsel %vm421_vm1, %v1731_v7, %v838_v25  ;;  %v762_v23 = vsel %vm548_vm4, %v1714_v63, %v687_v26  ;;  %v686_v24 = vsel %vm611_vm11, %v1712_v62, 0.0  ;;  %vm418_vm12 = vcmp.eq.s32.totalorder %v354_v19, 0 }
  0x9a   : > { %989 = vmatprep.subr.mxu0 %v913_v27  ;;  %v837_v33 = vsel %vm484_vm6, %v1725_v4, %v762_v23  ;;  %v761_v15 = vsel %vm547_vm10, %v1723_v3, %v686_v24  ;;  %vm482_vm13 = vcmp.eq.s32.totalorder %v354_v19, 1  ;;  %vm546_vm14 = vcmp.eq.s32.totalorder %v354_v19, 16 }
  0x9b   : > { %v912_v29 = vsel %vm420_vm5, %v1729_v6, %v837_v33  ;;  %v836_v34 = vsel %vm483_vm9, %v1727_v5, %v761_v15  ;;  %vm610_vm15 = vcmp.eq.s32.totalorder %v354_v19, 17  ;;  %v353_v30 = vsub.s32 %v1666_v37, %v1721_v2 }
  0x9c   : > { %990 = vmatpush1.msra.mxu0 %v912_v29  ;;  %v911_v35 = vsel %vm419_vm8, %v1731_v7, %v836_v34  ;;  %v685_v16 = vsel %vm610_vm15, %v1710_v61, 0.0  ;;  %v352_v41 = vsub.s32 %v1666_v37, %v1719_v1  ;;  %v351_v42 = vsub.s32 %v1669_v38, %v1721_v2 }
  0x9d   : > { %991 = vmatprep.subr.mxu0 %v911_v35  ;;  %v760_v43 = vsel %vm546_vm14, %v1714_v63, %v685_v16  ;;  %vm417_vm1 = vcmp.eq.s32.totalorder %v353_v30, 0  ;;  %vm481_vm0 = vcmp.eq.s32.totalorder %v353_v30, 1  ;;  %vm545_vm2 = vcmp.eq.s32.totalorder %v353_v30, 16 }
  0x9e   : > { %v835_v45 = vsel %vm482_vm13, %v1725_v4, %v760_v43  ;;  %vm609_vm3 = vcmp.eq.s32.totalorder %v353_v30, 17  ;;  %vm416_vm5 = vcmp.eq.s32.totalorder %v352_v41, 0  ;;  %vm480_vm6 = vcmp.eq.s32.totalorder %v352_v41, 1 }
  0x9f   : > { %v910_v46 = vsel %vm418_vm12, %v1729_v6, %v835_v45  ;;  %v684_v37 = vsel %vm609_vm3, %v1712_v62, 0.0  ;;  %vm544_vm4 = vcmp.eq.s32.totalorder %v352_v41, 16  ;;  %vm608_vm7 = vcmp.eq.s32.totalorder %v352_v41, 17 }
  0xa0   : > { %992 = vmatpush1.msra.mxu0 %v910_v46  ;;  %v759_v49 = vsel %vm545_vm2, %v1723_v3, %v684_v37  ;;  %v683_v50 = vsel %vm608_vm7, %v1710_v61, 0.0  ;;  %vm415_vm8 = vcmp.eq.s32.totalorder %v351_v42, 0  ;;  %vm479_vm9 = vcmp.eq.s32.totalorder %v351_v42, 1 }
  0xa1   : > { %v834_v53 = vsel %vm481_vm0, %v1727_v5, %v759_v49  ;;  %v758_v57 = vsel %vm544_vm4, %v1714_v63, %v683_v50  ;;  %vm543_vm10 = vcmp.eq.s32.totalorder %v351_v42, 16  ;;  %vm607_vm11 = vcmp.eq.s32.totalorder %v351_v42, 17 }
  0xa2   : > { %v909_v9 = vsel %vm417_vm1, %v1731_v7, %v834_v53  ;;  %v833_v31 = vsel %vm480_vm6, %v1725_v4, %v758_v57  ;;  %v682_v11 = vsel %vm607_vm11, %v1712_v62, 0.0  ;;  %v350_v12 = vsub.s32 %v1669_v38, %v1719_v1 }
  0xa3   : > { %993 = vmatprep.subr.mxu0 %v909_v9  ;;  %v908_v13 = vsel %vm416_vm5, %v1729_v6, %v833_v31  ;;  %v757_v18 = vsel %vm543_vm10, %v1723_v3, %v682_v11  ;;  %v349_v28 = vsub.s32 %v1672_v39, %v1721_v2  ;;  %v348_v14 = vsub.s32 %v1672_v39, %v1719_v1 }
  0xa4   : > { %994 = vmatpush1.msra.mxu0 %v908_v13  ;;  %v832_v19 = vsel %vm479_vm9, %v1727_v5, %v757_v18  ;;  %vm414_vm12 = vcmp.eq.s32.totalorder %v350_v12, 0  ;;  %vm478_vm13 = vcmp.eq.s32.totalorder %v350_v12, 1  ;;  %vm542_vm14 = vcmp.eq.s32.totalorder %v350_v12, 16 }
  0xa5   : > { %v907_v38 = vsel %vm415_vm8, %v1731_v7, %v832_v19  ;;  %vm606_vm15 = vcmp.eq.s32.totalorder %v350_v12, 17  ;;  %vm413_vm1 = vcmp.eq.s32.totalorder %v349_v28, 0  ;;  %vm477_vm0 = vcmp.eq.s32.totalorder %v349_v28, 1 }
  0xa6   : > { %995 = vmatprep.subr.mxu0 %v907_v38  ;;  %v681_v20 = vsel %vm606_vm15, %v1710_v61, 0.0  ;;  %vm541_vm2 = vcmp.eq.s32.totalorder %v349_v28, 16  ;;  %vm605_vm3 = vcmp.eq.s32.totalorder %v349_v28, 17  ;;  %vm412_vm5 = vcmp.eq.s32.totalorder %v348_v14, 0 }
  0xa7   : > { %v756_v39 = vsel %vm542_vm14, %v1714_v63, %v681_v20  ;;  %v680_v17 = vsel %vm605_vm3, %v1712_v62, 0.0  ;;  %vm476_vm6 = vcmp.eq.s32.totalorder %v348_v14, 1  ;;  %vm540_vm4 = vcmp.eq.s32.totalorder %v348_v14, 16 }
  0xa8   : > { %v831_v32 = vsel %vm478_vm13, %v1725_v4, %v756_v39  ;;  %v755_v21 = vsel %vm541_vm2, %v1723_v3, %v680_v17  ;;  %vm604_vm7 = vcmp.eq.s32.totalorder %v348_v14, 17  ;;  %v347_v22 = vsub.s32 %v1633_v10, %v1721_v2 }
  0xa9   : > { %v906_v36 = vsel %vm414_vm12, %v1729_v6, %v831_v32  ;;  %v830_v25 = vsel %vm477_vm0, %v1727_v5, %v755_v21  ;;  %v679_v26 = vsel %vm604_vm7, %v1710_v61, 0.0  ;;  %v346_v27 = vsub.s32 %v1633_v10, %v1719_v1 }
  0xaa   : > { %996 = vmatpush1.msra.mxu0 %v906_v36  ;;  %v905_v23 = vsel %vm413_vm1, %v1731_v7, %v830_v25  ;;  %v754_v24 = vsel %vm540_vm4, %v1714_v63, %v679_v26  ;;  %vm411_vm8 = vcmp.eq.s32.totalorder %v347_v22, 0  ;;  %vm475_vm9 = vcmp.eq.s32.totalorder %v347_v22, 1 }
  0xab   : > { %997 = vmatprep.subr.mxu0 %v905_v23  ;;  %v829_v33 = vsel %vm476_vm6, %v1725_v4, %v754_v24  ;;  %vm539_vm10 = vcmp.eq.s32.totalorder %v347_v22, 16  ;;  %vm603_vm11 = vcmp.eq.s32.totalorder %v347_v22, 17  ;;  %vm410_vm12 = vcmp.eq.s32.totalorder %v346_v27, 0 }
  0xac   : > { %v904_v15 = vsel %vm412_vm5, %v1729_v6, %v829_v33  ;;  %v678_v29 = vsel %vm603_vm11, %v1712_v62, 0.0  ;;  %vm474_vm13 = vcmp.eq.s32.totalorder %v346_v27, 1  ;;  %vm538_vm14 = vcmp.eq.s32.totalorder %v346_v27, 16 }
  0xad   : > { %998 = vmatpush1.msra.mxu0 %v904_v15  ;;  %v753_v34 = vsel %vm539_vm10, %v1723_v3, %v678_v29  ;;  %vm602_vm15 = vcmp.eq.s32.totalorder %v346_v27, 17  ;;  %v409_v30 = vsub.s32 %v1675_v40, %v1721_v2  ;;  %v408_v35 = vsub.s32 %v1675_v40, %v1719_v1 }
  0xae   : > { %v828_v16 = vsel %vm475_vm9, %v1727_v5, %v753_v34  ;;  %v677_v41 = vsel %vm602_vm15, %v1710_v61, 0.0  ;;  %v407_v42 = vsub.s32 %v1678_v44, %v1721_v2  ;;  %v406_v43 = vsub.s32 %v1678_v44, %v1719_v1 }
  0xaf   : > { %v903_v45 = vsel %vm411_vm8, %v1731_v7, %v828_v16  ;;  %v752_v46 = vsel %vm538_vm14, %v1714_v63, %v677_v41  ;;  %vm473_vm1 = vcmp.eq.s32.totalorder %v409_v30, 0  ;;  %vm537_vm0 = vcmp.eq.s32.totalorder %v409_v30, 1 }
  0xb0   : > { %999 = vmatprep.subr.mxu0 %v903_v45  ;;  %v827_v40 = vsel %vm474_vm13, %v1725_v4, %v752_v46  ;;  %vm601_vm2 = vcmp.eq.s32.totalorder %v409_v30, 16  ;;  %vm665_vm3 = vcmp.eq.s32.totalorder %v409_v30, 17  ;;  %vm472_vm5 = vcmp.eq.s32.totalorder %v408_v35, 0 }
  0xb1   : > { %v902_v37 = vsel %vm410_vm12, %v1729_v6, %v827_v40  ;;  %v740_v49 = vsel %vm665_vm3, %v1712_v62, 0.0  ;;  %vm536_vm6 = vcmp.eq.s32.totalorder %v408_v35, 1  ;;  %vm600_vm4 = vcmp.eq.s32.totalorder %v408_v35, 16 }
  0xb2   : > { %1000 = vmatpush1.msra.mxu0 %v902_v37  ;;  %v815_v44 = vsel %vm601_vm2, %v1723_v3, %v740_v49  ;;  %vm664_vm7 = vcmp.eq.s32.totalorder %v408_v35, 17  ;;  %vm471_vm8 = vcmp.eq.s32.totalorder %v407_v42, 0  ;;  %vm535_vm9 = vcmp.eq.s32.totalorder %v407_v42, 1 }
  0xb3   : > { %v890_v50 = vsel %vm537_vm0, %v1727_v5, %v815_v44  ;;  %v739_v53 = vsel %vm664_vm7, %v1710_v61, 0.0  ;;  %vm599_vm10 = vcmp.eq.s32.totalorder %v407_v42, 16  ;;  %vm663_vm11 = vcmp.eq.s32.totalorder %v407_v42, 17 }
  0xb4   : > { %v965_v57 = vsel %vm473_vm1, %v1731_v7, %v890_v50  ;;  %v814_v9 = vsel %vm600_vm4, %v1714_v63, %v739_v53  ;;  %v738_v31 = vsel %vm663_vm11, %v1712_v62, 0.0  ;;  %vm470_vm12 = vcmp.eq.s32.totalorder %v406_v43, 0 }
  0xb5   : > { %1001 = vmatprep.subr.mxu0 %v965_v57  ;;  %v889_v11 = vsel %vm536_vm6, %v1725_v4, %v814_v9  ;;  %v813_v12 = vsel %vm599_vm10, %v1723_v3, %v738_v31  ;;  %vm534_vm13 = vcmp.eq.s32.totalorder %v406_v43, 1  ;;  %vm598_vm14 = vcmp.eq.s32.totalorder %v406_v43, 16 }
  0xb6   : > { %v964_v13 = vsel %vm472_vm5, %v1729_v6, %v889_v11  ;;  %v888_v18 = vsel %vm535_vm9, %v1727_v5, %v813_v12  ;;  %vm662_vm15 = vcmp.eq.s32.totalorder %v406_v43, 17  ;;  %v405_v28 = vsub.s32 %v1681_v47, %v1721_v2 }
  0xb7   : > { %1002 = vmatpush2.msra.mxu0 %v964_v13  ;;  %v963_v14 = vsel %vm471_vm8, %v1731_v7, %v888_v18  ;;  %v737_v19 = vsel %vm662_vm15, %v1710_v61, 0.0  ;;  %v404_v38 = vsub.s32 %v1681_v47, %v1719_v1  ;;  %v403_v20 = vsub.s32 %v1684_v48, %v1721_v2 }
  0xb8   : > { %1003 = vmatprep.subr.mxu0 %v963_v14  ;;  %v812_v39 = vsel %vm598_vm14, %v1714_v63, %v737_v19  ;;  %vm469_vm1 = vcmp.eq.s32.totalorder %v405_v28, 0  ;;  %vm533_vm0 = vcmp.eq.s32.totalorder %v405_v28, 1  ;;  %vm597_vm2 = vcmp.eq.s32.totalorder %v405_v28, 16 }
  0xb9   : > { %v887_v17 = vsel %vm534_vm13, %v1725_v4, %v812_v39  ;;  %vm661_vm3 = vcmp.eq.s32.totalorder %v405_v28, 17  ;;  %vm468_vm5 = vcmp.eq.s32.totalorder %v404_v38, 0  ;;  %vm532_vm6 = vcmp.eq.s32.totalorder %v404_v38, 1 }
  0xba   : > { %v962_v32 = vsel %vm470_vm12, %v1729_v6, %v887_v17  ;;  %v736_v47 = vsel %vm661_vm3, %v1712_v62, 0.0  ;;  %vm596_vm4 = vcmp.eq.s32.totalorder %v404_v38, 16  ;;  %vm660_vm7 = vcmp.eq.s32.totalorder %v404_v38, 17 }
  0xbb   : > { %1004 = vmatpush2.msra.mxu0 %v962_v32  ;;  %v811_v21 = vsel %vm597_vm2, %v1723_v3, %v736_v47  ;;  %v735_v22 = vsel %vm660_vm7, %v1710_v61, 0.0  ;;  %vm467_vm8 = vcmp.eq.s32.totalorder %v403_v20, 0  ;;  %vm531_vm9 = vcmp.eq.s32.totalorder %v403_v20, 1 }
  0xbc   : > { %v886_v36 = vsel %vm533_vm0, %v1727_v5, %v811_v21  ;;  %v810_v25 = vsel %vm596_vm4, %v1714_v63, %v735_v22  ;;  %vm595_vm10 = vcmp.eq.s32.totalorder %v403_v20, 16  ;;  %vm659_vm11 = vcmp.eq.s32.totalorder %v403_v20, 17 }
  0xbd   : > { %v961_v26 = vsel %vm469_vm1, %v1731_v7, %v886_v36  ;;  %v885_v27 = vsel %vm532_vm6, %v1725_v4, %v810_v25  ;;  %v734_v23 = vsel %vm659_vm11, %v1712_v62, 0.0  ;;  %v402_v24 = vsub.s32 %v1684_v48, %v1719_v1 }
  0xbe   : > { %1005 = vmatprep.subr.mxu0 %v961_v26  ;;  %v960_v33 = vsel %vm468_vm5, %v1729_v6, %v885_v27  ;;  %v809_v15 = vsel %vm595_vm10, %v1723_v3, %v734_v23  ;;  %v401_v29 = vsub.s32 %v1687_v51, %v1721_v2  ;;  %v400_v34 = vsub.s32 %v1687_v51, %v1719_v1 }
  0xbf   : > { %1006 = vmatpush2.msra.mxu0 %v960_v33  ;;  %v884_v30 = vsel %vm531_vm9, %v1727_v5, %v809_v15  ;;  %vm466_vm12 = vcmp.eq.s32.totalorder %v402_v24, 0  ;;  %vm530_vm13 = vcmp.eq.s32.totalorder %v402_v24, 1  ;;  %vm594_vm14 = vcmp.eq.s32.totalorder %v402_v24, 16 }
  0xc0   : > { %v959_v48 = vsel %vm467_vm8, %v1731_v7, %v884_v30  ;;  %vm658_vm15 = vcmp.eq.s32.totalorder %v402_v24, 17  ;;  %vm465_vm1 = vcmp.eq.s32.totalorder %v401_v29, 0  ;;  %vm529_vm0 = vcmp.eq.s32.totalorder %v401_v29, 1 }
  0xc1   : > { %1007 = vmatprep.subr.mxu0 %v959_v48  ;;  %v733_v35 = vsel %vm658_vm15, %v1710_v61, 0.0  ;;  %vm593_vm2 = vcmp.eq.s32.totalorder %v401_v29, 16  ;;  %vm657_vm3 = vcmp.eq.s32.totalorder %v401_v29, 17  ;;  %vm464_vm5 = vcmp.eq.s32.totalorder %v400_v34, 0 }
  0xc2   : > { %v808_v51 = vsel %vm594_vm14, %v1714_v63, %v733_v35  ;;  %v732_v16 = vsel %vm657_vm3, %v1712_v62, 0.0  ;;  %vm528_vm6 = vcmp.eq.s32.totalorder %v400_v34, 1  ;;  %vm592_vm4 = vcmp.eq.s32.totalorder %v400_v34, 16 }
  0xc3   : > { %v883_v41 = vsel %vm530_vm13, %v1725_v4, %v808_v51  ;;  %v807_v42 = vsel %vm593_vm2, %v1723_v3, %v732_v16  ;;  %vm656_vm7 = vcmp.eq.s32.totalorder %v400_v34, 17  ;;  %v399_v43 = vsub.s32 %v1690_v52, %v1721_v2 }
  0xc4   : > { %v958_v45 = vsel %vm466_vm12, %v1729_v6, %v883_v41  ;;  %v882_v46 = vsel %vm529_vm0, %v1727_v5, %v807_v42  ;;  %v731_v40 = vsel %vm656_vm7, %v1710_v61, 0.0  ;;  %v398_v37 = vsub.s32 %v1690_v52, %v1719_v1 }
  0xc5   : > { %1008 = vmatpush2.msra.mxu0 %v958_v45  ;;  %v957_v49 = vsel %vm465_vm1, %v1731_v7, %v882_v46  ;;  %v806_v44 = vsel %vm592_vm4, %v1714_v63, %v731_v40  ;;  %vm463_vm8 = vcmp.eq.s32.totalorder %v399_v43, 0  ;;  %vm527_vm9 = vcmp.eq.s32.totalorder %v399_v43, 1 }
  0xc6   : > { %1009 = vmatprep.subr.mxu0 %v957_v49  ;;  %v881_v50 = vsel %vm528_vm6, %v1725_v4, %v806_v44  ;;  %vm591_vm10 = vcmp.eq.s32.totalorder %v399_v43, 16  ;;  %vm655_vm11 = vcmp.eq.s32.totalorder %v399_v43, 17  ;;  %vm462_vm12 = vcmp.eq.s32.totalorder %v398_v37, 0 }
  0xc7   : > { %v956_v53 = vsel %vm464_vm5, %v1729_v6, %v881_v50  ;;  %v730_v52 = vsel %vm655_vm11, %v1712_v62, 0.0  ;;  %vm526_vm13 = vcmp.eq.s32.totalorder %v398_v37, 1  ;;  %vm590_vm14 = vcmp.eq.s32.totalorder %v398_v37, 16 }
  0xc8   : > { %1010 = vmatpush2.msra.mxu0 %v956_v53  ;;  %v805_v57 = vsel %vm591_vm10, %v1723_v3, %v730_v52  ;;  %vm654_vm15 = vcmp.eq.s32.totalorder %v398_v37, 17  ;;  %v397_v9 = vsub.s32 %v1693_v54, %v1721_v2  ;;  %v396_v31 = vsub.s32 %v1693_v54, %v1719_v1 }
  0xc9   : > { %v880_v11 = vsel %vm527_vm9, %v1727_v5, %v805_v57  ;;  %v729_v12 = vsel %vm654_vm15, %v1710_v61, 0.0  ;;  %v395_v13 = vsub.s32 %v1696_v55, %v1721_v2  ;;  %v394_v18 = vsub.s32 %v1696_v55, %v1719_v1 }
  0xca   : > { %v955_v28 = vsel %vm463_vm8, %v1731_v7, %v880_v11  ;;  %v804_v14 = vsel %vm590_vm14, %v1714_v63, %v729_v12  ;;  %vm461_vm1 = vcmp.eq.s32.totalorder %v397_v9, 0  ;;  %vm525_vm0 = vcmp.eq.s32.totalorder %v397_v9, 1 }
  0xcb   : > { %1011 = vmatprep.subr.mxu0 %v955_v28  ;;  %v879_v54 = vsel %vm526_vm13, %v1725_v4, %v804_v14  ;;  %vm589_vm2 = vcmp.eq.s32.totalorder %v397_v9, 16  ;;  %vm653_vm3 = vcmp.eq.s32.totalorder %v397_v9, 17  ;;  %vm460_vm5 = vcmp.eq.s32.totalorder %v396_v31, 0 }
  0xcc   : > { %v954_v19 = vsel %vm462_vm12, %v1729_v6, %v879_v54  ;;  %v728_v38 = vsel %vm653_vm3, %v1712_v62, 0.0  ;;  %vm524_vm6 = vcmp.eq.s32.totalorder %v396_v31, 1  ;;  %vm588_vm4 = vcmp.eq.s32.totalorder %v396_v31, 16 }
  0xcd   : > { %1012 = vmatpush2.msra.mxu0 %v954_v19  ;;  %v803_v55 = vsel %vm589_vm2, %v1723_v3, %v728_v38  ;;  %vm652_vm7 = vcmp.eq.s32.totalorder %v396_v31, 17  ;;  %vm459_vm8 = vcmp.eq.s32.totalorder %v395_v13, 0  ;;  %vm523_vm9 = vcmp.eq.s32.totalorder %v395_v13, 1 }
  0xce   : > { %v878_v20 = vsel %vm525_vm0, %v1727_v5, %v803_v55  ;;  %v727_v39 = vsel %vm652_vm7, %v1710_v61, 0.0  ;;  %vm587_vm10 = vcmp.eq.s32.totalorder %v395_v13, 16  ;;  %vm651_vm11 = vcmp.eq.s32.totalorder %v395_v13, 17 }
  0xcf   : > { %v953_v17 = vsel %vm461_vm1, %v1731_v7, %v878_v20  ;;  %v802_v32 = vsel %vm588_vm4, %v1714_v63, %v727_v39  ;;  %v726_v47 = vsel %vm651_vm11, %v1712_v62, 0.0  ;;  %vm458_vm12 = vcmp.eq.s32.totalorder %v394_v18, 0 }
  0xd0   : > { %1013 = vmatprep.subr.mxu0 %v953_v17  ;;  %v877_v21 = vsel %vm524_vm6, %v1725_v4, %v802_v32  ;;  %v801_v22 = vsel %vm587_vm10, %v1723_v3, %v726_v47  ;;  %vm522_vm13 = vcmp.eq.s32.totalorder %v394_v18, 1  ;;  %vm586_vm14 = vcmp.eq.s32.totalorder %v394_v18, 16 }
  0xd1   : > { %v952_v36 = vsel %vm460_vm5, %v1729_v6, %v877_v21  ;;  %v876_v25 = vsel %vm523_vm9, %v1727_v5, %v801_v22  ;;  %vm650_vm15 = vcmp.eq.s32.totalorder %v394_v18, 17  ;;  %v393_v26 = vsub.s32 %v1699_v56, %v1721_v2 }
  0xd2   : > { %1014 = vmatpush2.msra.mxu0 %v952_v36  ;;  %v951_v27 = vsel %vm459_vm8, %v1731_v7, %v876_v25  ;;  %v725_v23 = vsel %vm650_vm15, %v1710_v61, 0.0  ;;  %v392_v24 = vsub.s32 %v1699_v56, %v1719_v1  ;;  %v391_v33 = vsub.s32 %v1702_v58, %v1721_v2 }
  0xd3   : > { %1015 = vmatprep.subr.mxu0 %v951_v27  ;;  %v800_v15 = vsel %vm586_vm14, %v1714_v63, %v725_v23  ;;  %vm457_vm1 = vcmp.eq.s32.totalorder %v393_v26, 0  ;;  %vm521_vm0 = vcmp.eq.s32.totalorder %v393_v26, 1  ;;  %vm585_vm2 = vcmp.eq.s32.totalorder %v393_v26, 16 }
  0xd4   : > { %v875_v29 = vsel %vm522_vm13, %v1725_v4, %v800_v15  ;;  %vm649_vm3 = vcmp.eq.s32.totalorder %v393_v26, 17  ;;  %vm456_vm5 = vcmp.eq.s32.totalorder %v392_v24, 0  ;;  %vm520_vm6 = vcmp.eq.s32.totalorder %v392_v24, 1 }
  0xd5   : > { %v950_v34 = vsel %vm458_vm12, %v1729_v6, %v875_v29  ;;  %v724_v56 = vsel %vm649_vm3, %v1712_v62, 0.0  ;;  %vm584_vm4 = vcmp.eq.s32.totalorder %v392_v24, 16  ;;  %vm648_vm7 = vcmp.eq.s32.totalorder %v392_v24, 17  ;;  %v264_v24 = vld [vmem:[%s1626_s26] sm:$0xff] }
  0xd6   : > { %1016 = vmatpush2.msra.mxu0 %v950_v34  ;;  %v799_v30 = vsel %vm585_vm2, %v1723_v3, %v724_v56  ;;  %v723_v48 = vsel %vm648_vm7, %v1710_v61, 0.0  ;;  %vm455_vm8 = vcmp.eq.s32.totalorder %v391_v33, 0  ;;  %vm519_vm9 = vcmp.eq.s32.totalorder %v391_v33, 1 }
  0xd7   : > { %v874_v35 = vsel %vm521_vm0, %v1727_v5, %v799_v30  ;;  %v798_v51 = vsel %vm584_vm4, %v1714_v63, %v723_v48  ;;  %vm583_vm10 = vcmp.eq.s32.totalorder %v391_v33, 16  ;;  %vm647_vm11 = vcmp.eq.s32.totalorder %v391_v33, 17 }
  0xd8   : > { %v949_v16 = vsel %vm457_vm1, %v1731_v7, %v874_v35  ;;  %v873_v41 = vsel %vm520_vm6, %v1725_v4, %v798_v51  ;;  %v722_v42 = vsel %vm647_vm11, %v1712_v62, 0.0  ;;  %v390_v43 = vsub.s32 %v1702_v58, %v1719_v1 }
  0xd9   : > { %1017 = vmatprep.subr.mxu0 %v949_v16  ;;  %v948_v45 = vsel %vm456_vm5, %v1729_v6, %v873_v41  ;;  %v797_v46 = vsel %vm583_vm10, %v1723_v3, %v722_v42  ;;  %v389_v40 = vsub.s32 %v1705_v59, %v1721_v2  ;;  %v388_v37 = vsub.s32 %v1705_v59, %v1719_v1 }
  0xda   : > { %1018 = vmatpush2.msra.mxu0 %v948_v45  ;;  %v872_v49 = vsel %vm519_vm9, %v1727_v5, %v797_v46  ;;  %vm454_vm12 = vcmp.eq.s32.totalorder %v390_v43, 0  ;;  %vm518_vm13 = vcmp.eq.s32.totalorder %v390_v43, 1  ;;  %vm582_vm14 = vcmp.eq.s32.totalorder %v390_v43, 16 }
  0xdb   : > { %v947_v58 = vsel %vm455_vm8, %v1731_v7, %v872_v49  ;;  %vm646_vm15 = vcmp.eq.s32.totalorder %v390_v43, 17  ;;  %vm453_vm1 = vcmp.eq.s32.totalorder %v389_v40, 0  ;;  %vm517_vm0 = vcmp.eq.s32.totalorder %v389_v40, 1 }
  0xdc   : > { %1019 = vmatprep.subr.mxu0 %v947_v58  ;;  %v721_v44 = vsel %vm646_vm15, %v1710_v61, 0.0  ;;  %vm581_vm2 = vcmp.eq.s32.totalorder %v389_v40, 16  ;;  %vm645_vm3 = vcmp.eq.s32.totalorder %v389_v40, 17  ;;  %vm452_vm5 = vcmp.eq.s32.totalorder %v388_v37, 0 }
  0xdd   : > { %v796_v59 = vsel %vm582_vm14, %v1714_v63, %v721_v44  ;;  %v720_v50 = vsel %vm645_vm3, %v1712_v62, 0.0  ;;  %vm516_vm6 = vcmp.eq.s32.totalorder %v388_v37, 1  ;;  %vm580_vm4 = vcmp.eq.s32.totalorder %v388_v37, 16 }
  0xde   : > { %v871_v53 = vsel %vm518_vm13, %v1725_v4, %v796_v59  ;;  %v795_v52 = vsel %vm581_vm2, %v1723_v3, %v720_v50  ;;  %vm644_vm7 = vcmp.eq.s32.totalorder %v388_v37, 17  ;;  %v387_v57 = vsub.s32 %v1708_v60, %v1721_v2 }
  0xdf   : > { %v946_v9 = vsel %vm454_vm12, %v1729_v6, %v871_v53  ;;  %v870_v31 = vsel %vm517_vm0, %v1727_v5, %v795_v52  ;;  %v719_v11 = vsel %vm644_vm7, %v1710_v61, 0.0  ;;  %v386_v12 = vsub.s32 %v1708_v60, %v1719_v1 }
  0xe0   : > { %1020 = vmatpush2.msra.mxu0 %v946_v9  ;;  %v945_v13 = vsel %vm453_vm1, %v1731_v7, %v870_v31  ;;  %v794_v18 = vsel %vm580_vm4, %v1714_v63, %v719_v11  ;;  %vm451_vm8 = vcmp.eq.s32.totalorder %v387_v57, 0  ;;  %vm515_vm9 = vcmp.eq.s32.totalorder %v387_v57, 1 }
  0xe1   : > { %1021 = vmatprep.subr.mxu0 %v945_v13  ;;  %v869_v28 = vsel %vm516_vm6, %v1725_v4, %v794_v18  ;;  %vm579_vm10 = vcmp.eq.s32.totalorder %v387_v57, 16  ;;  %vm643_vm11 = vcmp.eq.s32.totalorder %v387_v57, 17  ;;  %vm450_vm12 = vcmp.eq.s32.totalorder %v386_v12, 0 }
  0xe2   : > { %v944_v14 = vsel %vm452_vm5, %v1729_v6, %v869_v28  ;;  %v718_v60 = vsel %vm643_vm11, %v1712_v62, 0.0  ;;  %vm514_vm13 = vcmp.eq.s32.totalorder %v386_v12, 1  ;;  %vm578_vm14 = vcmp.eq.s32.totalorder %v386_v12, 16 }
  0xe3   : > { %1022 = vmatpush2.msra.mxu0 %v944_v14  ;;  %v793_v54 = vsel %vm579_vm10, %v1723_v3, %v718_v60  ;;  %vm642_vm15 = vcmp.eq.s32.totalorder %v386_v12, 17  ;;  %v385_v19 = vsub.s32 %v1717_v0, %v1721_v2  ;;  %v384_v38 = vsub.s32 %v1717_v0, %v1719_v1 }
  0xe4   : > { %v868_v55 = vsel %vm515_vm9, %v1727_v5, %v793_v54  ;;  %v717_v20 = vsel %vm642_vm15, %v1710_v61, 0.0  ;;  %v383_v39 = vsub.s32 %v1734_v8, %v1721_v2  ;;  %v382_v17 = vsub.s32 %v1734_v8, %v1719_v1 }
  0xe5   : > { %v943_v32 = vsel %vm451_vm8, %v1731_v7, %v868_v55  ;;  %v792_v47 = vsel %vm578_vm14, %v1714_v63, %v717_v20  ;;  %vm449_vm1 = vcmp.eq.s32.totalorder %v385_v19, 0  ;;  %vm513_vm0 = vcmp.eq.s32.totalorder %v385_v19, 1 }
  0xe6   : > { %1023 = vmatprep.subr.mxu0 %v943_v32  ;;  %v867_v0 = vsel %vm514_vm13, %v1725_v4, %v792_v47  ;;  %vm577_vm2 = vcmp.eq.s32.totalorder %v385_v19, 16  ;;  %vm641_vm3 = vcmp.eq.s32.totalorder %v385_v19, 17  ;;  %vm448_vm5 = vcmp.eq.s32.totalorder %v384_v38, 0 }
  0xe7   : > { %v942_v21 = vsel %vm450_vm12, %v1729_v6, %v867_v0  ;;  %v716_v22 = vsel %vm641_vm3, %v1712_v62, 0.0  ;;  %vm512_vm6 = vcmp.eq.s32.totalorder %v384_v38, 1  ;;  %vm576_vm4 = vcmp.eq.s32.totalorder %v384_v38, 16 }
  0xe8   : > { %1024 = vmatpush2.msra.mxu0 %v942_v21  ;;  %v791_v8 = vsel %vm577_vm2, %v1723_v3, %v716_v22  ;;  %vm640_vm7 = vcmp.eq.s32.totalorder %v384_v38, 17  ;;  %vm447_vm8 = vcmp.eq.s32.totalorder %v383_v39, 0  ;;  %vm511_vm9 = vcmp.eq.s32.totalorder %v383_v39, 1 }
  0xe9   : > { %v866_v36 = vsel %vm513_vm0, %v1727_v5, %v791_v8  ;;  %v715_v25 = vsel %vm640_vm7, %v1710_v61, 0.0  ;;  %vm575_vm10 = vcmp.eq.s32.totalorder %v383_v39, 16  ;;  %vm639_vm11 = vcmp.eq.s32.totalorder %v383_v39, 17 }
  0xea   : > { %v941_v26 = vsel %vm449_vm1, %v1731_v7, %v866_v36  ;;  %v790_v27 = vsel %vm576_vm4, %v1714_v63, %v715_v25  ;;  %v714_v23 = vsel %vm639_vm11, %v1712_v62, 0.0  ;;  %vm446_vm12 = vcmp.eq.s32.totalorder %v382_v17, 0 }
  0xeb   : > { %1025 = vmatprep.subr.mxu0 %v941_v26  ;;  %v865_v33 = vsel %vm512_vm6, %v1725_v4, %v790_v27  ;;  %v789_v15 = vsel %vm575_vm10, %v1723_v3, %v714_v23  ;;  %vm510_vm13 = vcmp.eq.s32.totalorder %v382_v17, 1  ;;  %vm574_vm14 = vcmp.eq.s32.totalorder %v382_v17, 16 }
  0xec   : > { %v940_v29 = vsel %vm448_vm5, %v1729_v6, %v865_v33  ;;  %v864_v34 = vsel %vm511_vm9, %v1727_v5, %v789_v15  ;;  %vm638_vm15 = vcmp.eq.s32.totalorder %v382_v17, 17  ;;  %v323_v56 = vadd.s32 136, %v1633_v10 }
  0xed   : > { %1026 = vmatpush2.msra.mxu0 %v940_v29  ;;  %v939_v30 = vsel %vm447_vm8, %v1731_v7, %v864_v34  ;;  %v713_v48 = vsel %vm638_vm15, %v1710_v61, 0.0  ;;  %v322_v35 = vadd.s32 128, %v1633_v10  ;;  %v967_v51 = vcombine.high %v264_v24, %v264_v24 }
  0xee   : > { %1027 = vmatprep.subr.mxu0 %v939_v30  ;;  %v788_v16 = vsel %vm574_vm14, %v1714_v63, %v713_v48  ;;  %v381_v41 = vsub.s32 %v323_v56, %v1721_v2  ;;  %v380_v42 = vsub.s32 %v323_v56, %v1719_v1 }
  0xef   : > { %v863_v43 = vsel %vm510_vm13, %v1725_v4, %v788_v16  ;;  %v379_v45 = vsub.s32 %v322_v35, %v1721_v2  ;;  %1033 = vmatprep.mubr.f32.mxu0 %v967_v51  ;;  %v378_v10 = vsub.s32 %v322_v35, %v1719_v1 }
  0xf0   : > { %v938_v46 = vsel %vm446_vm12, %v1729_v6, %v863_v43  ;;  %vm445_vm1 = vcmp.eq.s32.totalorder %v381_v41, 0  ;;  %vm573_vm0 = vcmp.eq.s32.totalorder %v381_v41, 16  ;;  %vm509_vm2 = vcmp.eq.s32.totalorder %v381_v41, 1 }
  0xf1   : > { %1028 = vmatpush2.msra.mxu0 %v938_v46  ;;  %vm637_vm3 = vcmp.eq.s32.totalorder %v381_v41, 17  ;;  %vm444_vm5 = vcmp.eq.s32.totalorder %v380_v42, 0  ;;  %vm572_vm6 = vcmp.eq.s32.totalorder %v380_v42, 16  ;;  %vm508_vm4 = vcmp.eq.s32.totalorder %v380_v42, 1 }
  0xf2   : > { %v712_v40 = vsel %vm637_vm3, %v1712_v62, 0.0  ;;  %vm636_vm7 = vcmp.eq.s32.totalorder %v380_v42, 17  ;;  %vm507_vm8 = vcmp.eq.s32.totalorder %v379_v45, 1  ;;  %vm571_vm9 = vcmp.eq.s32.totalorder %v379_v45, 16 }
  0xf3   : > { %v787_v2 = vsel %vm573_vm0, %v1723_v3, %v712_v40  ;;  %v711_v37 = vsel %vm636_vm7, %v1710_v61, 0.0  ;;  %vm635_vm10 = vcmp.eq.s32.totalorder %v379_v45, 17  ;;  %vm443_vm11 = vcmp.eq.s32.totalorder %v379_v45, 0 }
  0xf4   : > { %v862_v49 = vsel %vm509_vm2, %v1727_v5, %v787_v2  ;;  %v786_v1 = vsel %vm572_vm6, %v1714_v63, %v711_v37  ;;  %v710_v58 = vsel %vm635_vm10, %v1712_v62, 0.0  ;;  %vm506_vm12 = vcmp.eq.s32.totalorder %v378_v10, 1 }
  0xf5   : > { %v937_v44 = vsel %vm445_vm1, %v1731_v7, %v862_v49  ;;  %v861_v59 = vsel %vm508_vm4, %v1725_v4, %v786_v1  ;;  %v785_v50 = vsel %vm571_vm9, %v1723_v3, %v710_v58  ;;  %vm570_vm13 = vcmp.eq.s32.totalorder %v378_v10, 16 }
  0xf6   : > { %1029 = vmatprep.subr.mxu0 %v937_v44  ;;  %v936_v53 = vsel %vm444_vm5, %v1729_v6, %v861_v59  ;;  %v860_v52 = vsel %vm507_vm8, %v1727_v5, %v785_v50  ;;  %vm634_vm14 = vcmp.eq.s32.totalorder %v378_v10, 17  ;;  %vm442_vm15 = vcmp.eq.s32.totalorder %v378_v10, 0 }
  0xf7   : > { %1030 = vmatpush2.msra.mxu0 %v936_v53  ;;  %v935_v62 = vsel %vm443_vm11, %v1731_v7, %v860_v52  ;;  %v709_v57 = vsel %vm634_vm14, %v1710_v61, 0.0 }
  0xf8   : > { %1031 = vmatprep.subr.mxu0 %v935_v62  ;;  %v784_v3 = vsel %vm570_vm13, %v1714_v63, %v709_v57 }
  0xf9   : > { %v859_v9 = vsel %vm506_vm12, %v1725_v4, %v784_v3 }
  0xfa   : > { %v934_v31 = vsel %vm442_vm15, %v1729_v6, %v859_v9 }
  0xfb   : > { %1032 = vmatpush2.msra.mxu0 %v934_v31 }
  0xfc   : > { %1034 = vmatmul.mubr.f32.vlgmr.msra.gmra.mxu0 %v264_v24 }
 0x1bc   : > { %v1035_v5 = vpop.f32.mrf.mxu0 }
 0x1be   : > { %v1037_v7 = vpop.f32.mrf.mxu0 }
 0x1bf   : > { %v1042_v11 = vcombine.low %v1035_v5, %v1037_v7 }
 0x1c1   : > { %1044 = vst [vmem:[%s260_s20] sm:$0xff] %v1042_v11 }
 0x1c2   : > { %1383 = shalt.err (!%p1380_p4)
}
 0x1c3   : > { %s1384_s6 = scalar_lea.hbm %s1060_s25, 128  ;;  %s1388_s7 = scalar_lea.hbm %s2256_s3, 256 }
 0x1c4   : > { %p1385_p6 = scmp.ne.s32.totalorder %s1060_s25, %s1384_s6  ;;  %p1389_p7 = scmp.lt.s32.totalorder %s1060_s25, %s2256_s3 }
 0x1c5   : > { %p1390_p12 = scmp.lt.s32.totalorder %s1388_s7, %s1384_s6 }
 0x1c6   : > { %p1386_p11 = pnand %p1385_p6, %p2269_p2 }
 0x1c7   : > { %p1391_p5 = por %p1390_p12, %p1389_p7 }
 0x1c8   : > { %p1387_p13 = pneg %p1386_p11 }
 0x1ca   : > { %p1392_p10 = pnand %p1391_p5, %p1387_p13 }
 0x1cc   : > { %1395 = shalt.err (!%p1392_p10)
}
 0x1cd   : > { %1217 = dma.vmem_to_hbm [thread:$0]  (%p2269_p2), %s1063_s9, 128, %s1060_s25, %s1046_s27  }
 0x1ce PF: > { %s1074_s8 = sand.u32 1, %s1434_s12   ;;  %p2270_p1 = scmp.ne.s32.totalorder %s2263_s22, 0 }
 0x1cf   : > { %p2271_p9 = scmp.ge.s32.totalorder %s1454_s17, 2  ;;  %s1075_s11 = scalar_lea.sflag [#allocation4], %s1074_s8 }
 0x1d1   : > { %p1231_p0 = pnand %p2271_p9, %p2270_p1 }
 0x1d3   : > { %p1232_p3 = pneg %p1231_p0 }
 0x1d5   : > { %1429 = dma.done.wait (%p1232_p3), %s1075_s11, 128  }
 0x1d6   : > { %1431 = vsyncadd (%p1232_p3), %s1075_s11, 4294967168  ;;  %s20_s17 = sadd.s32 1, %s1454_s17   ;;  %s2272_s12 = smov %s1438_s13 }
 0x1d7   : > { %p17_p8 = scmp.ge.s32.totalorder %s20_s17, 4   ;;  %s2273_s13 = smov %s1442_s14 }
 0x1d8   : > { %s2274_s14 = smov %s1528_s24  ;;  %s2275_s15 = smov %s1450_s16 }
 0x1d9   : > { %s2276_s16 = smov %s2278_s18  ;;  %19 = sbr.rel (!%p17_p8) target bundleno = 7 (0x7), region = 95 }
 0x1de   :  { %1080 = vsyncpa [#allocation3], 1 }
 0x1df   :  { %1082 = vsyncpa [#allocation3 + $0x1], 1 }
 0x1e0   :  { %1083 = vsyncpa [#allocation6], 1 }
 0x1e1   :  { %1085 = vsyncpa [#allocation6 + $0x1], 1 }
 0x1e2   :  { %1086 = vsyncpa [#allocation4], 1 }
 0x1e3   :  { %1088 = vsyncpa [#allocation4 + $0x1], 1 }

</bundles_post_ra>
